<compile_context>
chip_gen: v6e
topology: v6e:2x2x1
jax: 0.10.0
libtpu: 0.0.40
codegen_flags: <defaults>
</compile_context>

<pallas_src>
import functools

import jax
import jax.numpy as jnp
from jax.experimental import pallas as pl
from jax.experimental.pallas import tpu as pltpu


# ----------------------------- kernel helpers -----------------------------

def _layernorm(x, w, b, eps=1e-5):
    # Statistics always in f32.
    mu = jnp.mean(x, axis=-1, keepdims=True)
    var = jnp.mean((x - mu) ** 2, axis=-1, keepdims=True)
    return (x - mu) * jax.lax.rsqrt(var + eps) * w + b


def _gelu(x):
    # TODO(synk): PyTorch nn.GELU defaults to the exact erf formulation; the
    # tanh approximation is used here for a guaranteed TPU lowering.
    return jax.nn.gelu(x, approximate=True)


# ------------------------------- kernels -----------------------------------

def qkv_kernel(x_ref, ln1_w, ln1_b, q_w, q_b, k_w, k_b, v_w, v_b,
               q_out, k_out, v_out):
    """Pre-norm QKV projection for one (batch, seq-tile) block.

    q_w / q_b already carry the 1/sqrt(dh) attention scale (folded on host).
    Matmul operands are bf16; accumulation and LayerNorm stats are f32.
    """
    x = x_ref[...].astype(jnp.float32)                          # (tn, D)
    h = _layernorm(x, ln1_w[...], ln1_b[...]).astype(jnp.bfloat16)
    q = jnp.dot(h, q_w[...], preferred_element_type=jnp.float32) + q_b[...]
    k = jnp.dot(h, k_w[...], preferred_element_type=jnp.float32) + k_b[...]
    v = jnp.dot(h, v_w[...], preferred_element_type=jnp.float32) + v_b[...]
    q_out[...] = q.astype(q_out.dtype)
    k_out[...] = k.astype(k_out.dtype)
    v_out[...] = v.astype(v_out.dtype)


def attn_mlp_kernel(num_heads, apply_final_ln,
                    x_ref, q_ref, k_ref, v_ref,
                    proj_w, proj_b, ln2_w, ln2_b,
                    fc1_w, fc1_b, fc2_w, fc2_b,
                    *rest):
    """softmax(qk^T)v -> proj -> +res -> LN -> MLP(GELU) -> +res [-> final LN]."""
    if apply_final_ln:
        lnf_w, lnf_b, out_ref = rest
    else:
        (out_ref,) = rest

    x = x_ref[...].astype(jnp.float32)       # (tq, D)    residual stream (f32)
    q = q_ref[...]                            # (H, tq, dh) bf16, pre-scaled
    k = k_ref[...]                            # (H, N,  dh) bf16
    v = v_ref[...]                            # (H, N,  dh) bf16

    # Head-batched scores; contracting over dh absorbs the K transpose.
    s = jnp.einsum("hqd,hkd->hqk", q, k,
                   preferred_element_type=jnp.float32)          # (H, tq, N) f32
    s = s - jnp.max(s, axis=-1, keepdims=True)
    p = jnp.exp(s)
    p = p * pl.reciprocal(jnp.sum(p, axis=-1, keepdims=True), approx=True)
    ctx = jnp.einsum("hqk,hkd->hqd", p.astype(v.dtype), v,
                     preferred_element_type=jnp.float32)        # (H, tq, dh) f32

    # Fold the head concat into the output projection:  sum_h ctx[h] @ W_proj[h]
    pw = proj_w[...]                                            # (H, dh, D) bf16
    o = jnp.zeros(x.shape, jnp.float32)
    for hd in range(num_heads):                                 # static, small
        o = o + jnp.dot(ctx[hd].astype(jnp.bfloat16), pw[hd],
                        preferred_element_type=jnp.float32)
    x1 = x + o + proj_b[...]

    # --- MLP branch (pre-norm) ---
    h2 = _layernorm(x1, ln2_w[...], ln2_b[...]).astype(jnp.bfloat16)
    m = jnp.dot(h2, fc1_w[...], preferred_element_type=jnp.float32) + fc1_b[...]
    m = _gelu(m).astype(jnp.bfloat16)
    y = jnp.dot(m, fc2_w[...], preferred_element_type=jnp.float32) + fc2_b[...]
    out = x1 + y

    if apply_final_ln:
        out = _layernorm(out, lnf_w[...], lnf_b[...])
    out_ref[...] = out.astype(out_ref.dtype)


# ------------------------------ host wrappers ------------------------------

_VMEM_LIMIT = 64 * 1024 * 1024


def _const_spec(shape):
    nd = len(shape)
    return pl.BlockSpec(shape, lambda b, i, _nd=nd: (0,) * _nd)


def run_qkv(x, prep, tile):
    B, N, D = x.shape
    tn = min(tile, N)
    assert N % tn == 0
    weights = [prep["ln1_w"], prep["ln1_b"],
               prep["q_w"], prep["q_b"], prep["k_w"], prep["k_b"],
               prep["v_w"], prep["v_b"]]
    tok_spec = pl.BlockSpec((None, tn, D), lambda b, i: (b, i, 0))
    return pl.pallas_call(
        qkv_kernel,
        grid=(B, N // tn),
        in_specs=[tok_spec] + [_const_spec(w.shape) for w in weights],
        out_specs=[tok_spec] * 3,
        out_shape=[jax.ShapeDtypeStruct((B, N, D), jnp.bfloat16)] * 3,
        compiler_params=pltpu.CompilerParams(
            dimension_semantics=("parallel", "parallel"),
            vmem_limit_bytes=_VMEM_LIMIT),
    )(x, *weights)


def run_attn_mlp(x, q, k, v, prep, num_heads, tile, final_ln=None):
    B, N, D = x.shape
    H = num_heads
    dh = D // H
    tq = min(tile, N)
    assert N % tq == 0
    weights = [prep["proj_w"], prep["proj_b"], prep["ln2_w"], prep["ln2_b"],
               prep["fc1_w"], prep["fc1_b"], prep["fc2_w"], prep["fc2_b"]]
    apply_final = final_ln is not None
    if apply_final:
        weights += [final_ln["w"], final_ln["b"]]
    in_specs = [
        pl.BlockSpec((None, tq, D), lambda b, i: (b, i, 0)),         # residual x tile
        pl.BlockSpec((None, H, tq, dh), lambda b, i: (b, 0, i, 0)),  # q tile
        pl.BlockSpec((None, H, N, dh), lambda b, i: (b, 0, 0, 0)),   # full K
        pl.BlockSpec((None, H, N, dh), lambda b, i: (b, 0, 0, 0)),   # full V
    ] + [_const_spec(w.shape) for w in weights]
    return pl.pallas_call(
        functools.partial(attn_mlp_kernel, H, apply_final),
        grid=(B, N // tq),
        in_specs=in_specs,
        out_specs=pl.BlockSpec((None, tq, D), lambda b, i: (b, i, 0)),
        out_shape=jax.ShapeDtypeStruct((B, N, D), x.dtype),
        compiler_params=pltpu.CompilerParams(
            dimension_semantics=("parallel", "parallel"),
            vmem_limit_bytes=_VMEM_LIMIT),
    )(x, q, k, v, *weights)


def prepare_layer_params(p, num_heads):
    """Host-side param prep: split QKV, fold 1/sqrt(dh) into Q, reshape the
    output projection to (heads, dh, D), cast matmul weights to bf16."""
    D = p["qkv_w"].shape[0]
    dh = D // num_heads
    scale = float(dh) ** -0.5
    qkv_w, qkv_b = p["qkv_w"], p["qkv_b"]
    return {
        "ln1_w": p["ln1_w"], "ln1_b": p["ln1_b"],
        "q_w": (qkv_w[:, :D] * scale).astype(jnp.bfloat16),
        "q_b": qkv_b[:, :D] * scale,
        "k_w": qkv_w[:, D:2 * D].astype(jnp.bfloat16),
        "k_b": qkv_b[:, D:2 * D],
        "v_w": qkv_w[:, 2 * D:].astype(jnp.bfloat16),
        "v_b": qkv_b[:, 2 * D:],
        "proj_w": p["proj_w"].reshape(num_heads, dh, D).astype(jnp.bfloat16),
        "proj_b": p["proj_b"],
        "ln2_w": p["ln2_w"], "ln2_b": p["ln2_b"],
        "fc1_w": p["fc1_w"].astype(jnp.bfloat16), "fc1_b": p["fc1_b"],
        "fc2_w": p["fc2_w"].astype(jnp.bfloat16), "fc2_b": p["fc2_b"],
    }


def _split_heads(t, num_heads):
    # Layout plumbing in the wrapper (plain XLA), so the kernel sees
    # head-batched (H, N, dh) operands with no in-kernel lane slicing/concat.
    B, N, D = t.shape
    dh = D // num_heads
    return t.reshape(B, N, num_heads, dh).transpose(0, 2, 1, 3)


@functools.partial(jax.jit, static_argnames=("num_heads", "tile"))
def encoder_forward(x, layer_params, final_norm_params, num_heads, tile=128):
    depth = len(layer_params)
    for li, p in enumerate(layer_params):
        prep = prepare_layer_params(p, num_heads)
        q, k, v = run_qkv(x, prep, tile)
        q = _split_heads(q, num_heads)
        k = _split_heads(k, num_heads)
        v = _split_heads(v, num_heads)
        is_last = li == depth - 1
        x = run_attn_mlp(x, q, k, v, prep, num_heads, tile,
                         final_ln=final_norm_params if is_last else None)
    return x


# ----------------------------- parameter init ------------------------------

def xavier_uniform(key, fan_in, fan_out):
    bound = (6.0 / (fan_in + fan_out)) ** 0.5
    return jax.random.uniform(key, (fan_in, fan_out), jnp.float32, -bound, bound)


def init_params(key, embed_dim, depth, mlp_ratio):
    hidden = int(embed_dim * mlp_ratio)
    layers = []
    for _ in range(depth):
        key, k_qkv, k_proj, k_fc1, k_fc2 = jax.random.split(key, 5)
        layers.append({
            "ln1_w": jnp.ones((1, embed_dim), jnp.float32),
            "ln1_b": jnp.zeros((1, embed_dim), jnp.float32),
            "qkv_w": xavier_uniform(k_qkv, embed_dim, 3 * embed_dim),
            "qkv_b": jnp.zeros((1, 3 * embed_dim), jnp.float32),
            "proj_w": xavier_uniform(k_proj, embed_dim, embed_dim),
            "proj_b": jnp.zeros((1, embed_dim), jnp.float32),
            "ln2_w": jnp.ones((1, embed_dim), jnp.float32),
            "ln2_b": jnp.zeros((1, embed_dim), jnp.float32),
            "fc1_w": xavier_uniform(k_fc1, embed_dim, hidden),
            "fc1_b": jnp.zeros((1, hidden), jnp.float32),
            "fc2_w": xavier_uniform(k_fc2, hidden, embed_dim),
            "fc2_b": jnp.zeros((1, embed_dim), jnp.float32),
        })
    final_norm = {"w": jnp.ones((1, embed_dim), jnp.float32),
                  "b": jnp.zeros((1, embed_dim), jnp.float32)}
    return layers, final_norm


# ------------------------------ pure-JAX ref -------------------------------

def ref_forward(x, layer_params, final_norm_params, num_heads):
    def ln(v, w, b):
        mu = jnp.mean(v, axis=-1, keepdims=True)
        var = jnp.mean((v - mu) ** 2, axis=-1, keepdims=True)
        return (v - mu) / jnp.sqrt(var + 1e-5) * w + b

    B, N, D = x.shape
    dh = D // num_heads
    for p in layer_params:
        h = ln(x, p["ln1_w"], p["ln1_b"])
        qkv = h @ p["qkv_w"] + p["qkv_b"]
        q, k, v = qkv[..., :D], qkv[..., D:2 * D], qkv[..., 2 * D:]
        q = q.reshape(B, N, num_heads, dh).transpose(0, 2, 1, 3)
        k = k.reshape(B, N, num_heads, dh).transpose(0, 2, 1, 3)
        v = v.reshape(B, N, num_heads, dh).transpose(0, 2, 1, 3)
        s = jnp.einsum("bhqd,bhkd->bhqk", q, k) * (dh ** -0.5)
        a = jax.nn.softmax(s, axis=-1)
        o = jnp.einsum("bhqk,bhkd->bhqd", a, v).transpose(0, 2, 1, 3).reshape(B, N, D)
        x = x + (o @ p["proj_w"] + p["proj_b"])
        h2 = ln(x, p["ln2_w"], p["ln2_b"])
        m = jax.nn.gelu(h2 @ p["fc1_w"] + p["fc1_b"], approximate=True)
        x = x + (m @ p["fc2_w"] + p["fc2_b"])
    return ln(x, final_norm_params["w"], final_norm_params["b"])


# ---------------------------------- main -----------------------------------

if __name__ == "__main__":
    # Small, module-consistent shapes: batch=2, seq=8 tokens, embed_dim=32,
    # depth=2 blocks, 4 heads, mlp_ratio=4.
    B, N, D = 2, 8, 32
    DEPTH, HEADS, MLP_RATIO = 2, 4, 4.0

    key = jax.random.PRNGKey(0)
    key, kx, kp = jax.random.split(key, 3)
    x = jax.random.normal(kx, (B, N, D), jnp.float32)

    layer_params, final_norm_params = init_params(kp, D, DEPTH, MLP_RATIO)

    out = encoder_forward(x, layer_params, final_norm_params, HEADS, tile=128)
    out = jax.block_until_ready(out)

    ref = ref_forward(x, layer_params, final_norm_params, HEADS)
    assert out.shape == (B, N, D)
    # bf16 matmul operands (f32 accumulation) => compare at bf16-level tolerance.
    assert jnp.allclose(out, ref, atol=5e-2, rtol=5e-2), "mismatch vs pure-JAX reference"

    print("KERNEL_OK")
</pallas_src>

<mosaic_0001>
module attributes {stable_mosaic.version = 11 : i64} {
  func.func @qkv_kernel(%arg0: i32, %arg1: i32, %arg2: memref<1x8x32xf32, #tpu.memory_space<vmem>>, %arg3: memref<1x32xf32, #tpu.memory_space<vmem>>, %arg4: memref<1x32xf32, #tpu.memory_space<vmem>>, %arg5: memref<32x32xbf16, #tpu.memory_space<vmem>>, %arg6: memref<1x32xf32, #tpu.memory_space<vmem>>, %arg7: memref<32x32xbf16, #tpu.memory_space<vmem>>, %arg8: memref<1x32xf32, #tpu.memory_space<vmem>>, %arg9: memref<32x32xbf16, #tpu.memory_space<vmem>>, %arg10: memref<1x32xf32, #tpu.memory_space<vmem>>, %arg11: memref<1x8x32xbf16, #tpu.memory_space<vmem>>, %arg12: memref<1x8x32xbf16, #tpu.memory_space<vmem>>, %arg13: memref<1x8x32xbf16, #tpu.memory_space<vmem>>) attributes {dimension_semantics = [#tpu.dimension_semantics<parallel>, #tpu.dimension_semantics<parallel>], iteration_bounds = array<i64: 2, 1>, scalar_prefetch = 0 : i64, scratch_operands = 0 : i64, tpu.core_type = #tpu.core_type<tc>, window_params = [{transform_indices = @transform_0, window_bounds = array<i64: 1, 8, 32>}, {pipeline_mode = #tpu.pipeline_mode<synchronous>, transform_indices = @transform_1, window_bounds = array<i64: 1, 32>}, {pipeline_mode = #tpu.pipeline_mode<synchronous>, transform_indices = @transform_2, window_bounds = array<i64: 1, 32>}, {pipeline_mode = #tpu.pipeline_mode<synchronous>, transform_indices = @transform_3, window_bounds = array<i64: 32, 32>}, {pipeline_mode = #tpu.pipeline_mode<synchronous>, transform_indices = @transform_4, window_bounds = array<i64: 1, 32>}, {pipeline_mode = #tpu.pipeline_mode<synchronous>, transform_indices = @transform_5, window_bounds = array<i64: 32, 32>}, {pipeline_mode = #tpu.pipeline_mode<synchronous>, transform_indices = @transform_6, window_bounds = array<i64: 1, 32>}, {pipeline_mode = #tpu.pipeline_mode<synchronous>, transform_indices = @transform_7, window_bounds = array<i64: 32, 32>}, {pipeline_mode = #tpu.pipeline_mode<synchronous>, transform_indices = @transform_8, window_bounds = array<i64: 1, 32>}, {transform_indices = @transform_9, window_bounds = array<i64: 1, 8, 32>}, {transform_indices = @transform_10, window_bounds = array<i64: 1, 8, 32>}, {transform_indices = @transform_11, window_bounds = array<i64: 1, 8, 32>}]} {
    %c0 = arith.constant 0 : index
    %c0_0 = arith.constant 0 : index
    %c0_1 = arith.constant 0 : index
    %0 = vector.load %arg2[%c0, %c0_0, %c0_1] : memref<1x8x32xf32, #tpu.memory_space<vmem>>, vector<1x8x32xf32>
    %1 = vector.shape_cast %0 : vector<1x8x32xf32> to vector<8x32xf32>
    %c0_2 = arith.constant 0 : index
    %c0_3 = arith.constant 0 : index
    %2 = vector.load %arg3[%c0_2, %c0_3] : memref<1x32xf32, #tpu.memory_space<vmem>>, vector<1x32xf32>
    %c0_4 = arith.constant 0 : index
    %c0_5 = arith.constant 0 : index
    %3 = vector.load %arg4[%c0_4, %c0_5] : memref<1x32xf32, #tpu.memory_space<vmem>>, vector<1x32xf32>
    %cst = arith.constant dense<0.000000e+00> : vector<8xf32>
    %4 = vector.multi_reduction <add>, %1, %cst [1] : vector<8x32xf32> to vector<8xf32>
    %5 = vector.shape_cast %4 : vector<8xf32> to vector<8x1xf32>
    %cst_6 = arith.constant 3.200000e+01 : f32
    %6 = vector.broadcast %cst_6 : f32 to vector<8x1xf32>
    %7 = arith.divf %5, %6 : vector<8x1xf32>
    %8 = vector.broadcast %7 : vector<8x1xf32> to vector<8x32xf32>
    %9 = arith.subf %1, %8 : vector<8x32xf32>
    %10 = arith.mulf %9, %9 : vector<8x32xf32>
    %cst_7 = arith.constant dense<0.000000e+00> : vector<8xf32>
    %11 = vector.multi_reduction <add>, %10, %cst_7 [1] : vector<8x32xf32> to vector<8xf32>
    %12 = vector.shape_cast %11 : vector<8xf32> to vector<8x1xf32>
    %cst_8 = arith.constant 3.200000e+01 : f32
    %13 = vector.broadcast %cst_8 : f32 to vector<8x1xf32>
    %14 = arith.divf %12, %13 : vector<8x1xf32>
    %15 = vector.broadcast %7 : vector<8x1xf32> to vector<8x32xf32>
    %16 = arith.subf %1, %15 : vector<8x32xf32>
    %cst_9 = arith.constant 9.99999974E-6 : f32
    %17 = vector.broadcast %cst_9 : f32 to vector<8x1xf32>
    %18 = arith.addf %14, %17 : vector<8x1xf32>
    %19 = math.rsqrt %18 : vector<8x1xf32>
    %20 = vector.broadcast %19 : vector<8x1xf32> to vector<8x32xf32>
    %21 = arith.mulf %16, %20 : vector<8x32xf32>
    %22 = vector.broadcast %2 : vector<1x32xf32> to vector<8x32xf32>
    %23 = arith.mulf %21, %22 : vector<8x32xf32>
    %24 = vector.broadcast %3 : vector<1x32xf32> to vector<8x32xf32>
    %25 = arith.addf %23, %24 : vector<8x32xf32>
    %26 = arith.truncf %25 : vector<8x32xf32> to vector<8x32xbf16>
    %c0_10 = arith.constant 0 : index
    %c0_11 = arith.constant 0 : index
    %27 = vector.load %arg5[%c0_10, %c0_11] : memref<32x32xbf16, #tpu.memory_space<vmem>>, vector<32x32xbf16>
    %cst_12 = arith.constant dense<0.000000e+00> : vector<8x32xf32>
    %28 = tpu.matmul %26, %27, %cst_12 {dimension_numbers = #tpu.dot_dimension_numbers<[1], [0], [0], [1], [0, 0, 1, 1], [], []>} : vector<8x32xbf16>, vector<32x32xbf16>, vector<8x32xf32> -> vector<8x32xf32>
    %c0_13 = arith.constant 0 : index
    %c0_14 = arith.constant 0 : index
    %29 = vector.load %arg6[%c0_13, %c0_14] : memref<1x32xf32, #tpu.memory_space<vmem>>, vector<1x32xf32>
    %30 = vector.broadcast %29 : vector<1x32xf32> to vector<8x32xf32>
    %31 = arith.addf %28, %30 : vector<8x32xf32>
    %c0_15 = arith.constant 0 : index
    %c0_16 = arith.constant 0 : index
    %32 = vector.load %arg7[%c0_15, %c0_16] : memref<32x32xbf16, #tpu.memory_space<vmem>>, vector<32x32xbf16>
    %cst_17 = arith.constant dense<0.000000e+00> : vector<8x32xf32>
    %33 = tpu.matmul %26, %32, %cst_17 {dimension_numbers = #tpu.dot_dimension_numbers<[1], [0], [0], [1], [0, 0, 1, 1], [], []>} : vector<8x32xbf16>, vector<32x32xbf16>, vector<8x32xf32> -> vector<8x32xf32>
    %c0_18 = arith.constant 0 : index
    %c0_19 = arith.constant 0 : index
    %34 = vector.load %arg8[%c0_18, %c0_19] : memref<1x32xf32, #tpu.memory_space<vmem>>, vector<1x32xf32>
    %35 = vector.broadcast %34 : vector<1x32xf32> to vector<8x32xf32>
    %36 = arith.addf %33, %35 : vector<8x32xf32>
    %c0_20 = arith.constant 0 : index
    %c0_21 = arith.constant 0 : index
    %37 = vector.load %arg9[%c0_20, %c0_21] : memref<32x32xbf16, #tpu.memory_space<vmem>>, vector<32x32xbf16>
    %cst_22 = arith.constant dense<0.000000e+00> : vector<8x32xf32>
    %38 = tpu.matmul %26, %37, %cst_22 {dimension_numbers = #tpu.dot_dimension_numbers<[1], [0], [0], [1], [0, 0, 1, 1], [], []>} : vector<8x32xbf16>, vector<32x32xbf16>, vector<8x32xf32> -> vector<8x32xf32>
    %c0_23 = arith.constant 0 : index
    %c0_24 = arith.constant 0 : index
    %39 = vector.load %arg10[%c0_23, %c0_24] : memref<1x32xf32, #tpu.memory_space<vmem>>, vector<1x32xf32>
    %40 = vector.broadcast %39 : vector<1x32xf32> to vector<8x32xf32>
    %41 = arith.addf %38, %40 : vector<8x32xf32>
    %42 = arith.truncf %31 : vector<8x32xf32> to vector<8x32xbf16>
    %c0_25 = arith.constant 0 : index
    %c0_26 = arith.constant 0 : index
    %c0_27 = arith.constant 0 : index
    %43 = vector.load %arg11[%c0_25, %c0_26, %c0_27] : memref<1x8x32xbf16, #tpu.memory_space<vmem>>, vector<1x8x32xbf16>
    %44 = vector.shape_cast %43 : vector<1x8x32xbf16> to vector<8x32xbf16>
    %45 = vector.shape_cast %42 : vector<8x32xbf16> to vector<1x8x32xbf16>
    tpu.vector_store %arg11[%c0_25, %c0_26, %c0_27], %45 {strides = array<i32>} : memref<1x8x32xbf16, #tpu.memory_space<vmem>>, vector<1x8x32xbf16>,
    %46 = arith.truncf %36 : vector<8x32xf32> to vector<8x32xbf16>
    %c0_28 = arith.constant 0 : index
    %c0_29 = arith.constant 0 : index
    %c0_30 = arith.constant 0 : index
    %47 = vector.load %arg12[%c0_28, %c0_29, %c0_30] : memref<1x8x32xbf16, #tpu.memory_space<vmem>>, vector<1x8x32xbf16>
    %48 = vector.shape_cast %47 : vector<1x8x32xbf16> to vector<8x32xbf16>
    %49 = vector.shape_cast %46 : vector<8x32xbf16> to vector<1x8x32xbf16>
    tpu.vector_store %arg12[%c0_28, %c0_29, %c0_30], %49 {strides = array<i32>} : memref<1x8x32xbf16, #tpu.memory_space<vmem>>, vector<1x8x32xbf16>,
    %50 = arith.truncf %41 : vector<8x32xf32> to vector<8x32xbf16>
    %c0_31 = arith.constant 0 : index
    %c0_32 = arith.constant 0 : index
    %c0_33 = arith.constant 0 : index
    %51 = vector.load %arg13[%c0_31, %c0_32, %c0_33] : memref<1x8x32xbf16, #tpu.memory_space<vmem>>, vector<1x8x32xbf16>
    %52 = vector.shape_cast %51 : vector<1x8x32xbf16> to vector<8x32xbf16>
    %53 = vector.shape_cast %50 : vector<8x32xbf16> to vector<1x8x32xbf16>
    tpu.vector_store %arg13[%c0_31, %c0_32, %c0_33], %53 {strides = array<i32>} : memref<1x8x32xbf16, #tpu.memory_space<vmem>>, vector<1x8x32xbf16>,
    return
  }
  func.func @transform_0(%arg0: i32, %arg1: i32) -> (i32, i32, i32) {
    %c0_i32 = arith.constant 0 : i32
    %c0_i32_0 = arith.constant 0 : i32
    return %arg0, %arg1, %c0_i32 : i32, i32, i32
  }
  func.func @transform_1(%arg0: i32, %arg1: i32) -> (i32, i32) {
    %c0_i32 = arith.constant 0 : i32
    %c0_i32_0 = arith.constant 0 : i32
    %c0_i32_1 = arith.constant 0 : i32
    return %c0_i32, %c0_i32_0 : i32, i32
  }
  func.func @transform_2(%arg0: i32, %arg1: i32) -> (i32, i32) {
    %c0_i32 = arith.constant 0 : i32
    %c0_i32_0 = arith.constant 0 : i32
    %c0_i32_1 = arith.constant 0 : i32
    return %c0_i32, %c0_i32_0 : i32, i32
  }
  func.func @transform_3(%arg0: i32, %arg1: i32) -> (i32, i32) {
    %c0_i32 = arith.constant 0 : i32
    %c0_i32_0 = arith.constant 0 : i32
    %c0_i32_1 = arith.constant 0 : i32
    return %c0_i32, %c0_i32_0 : i32, i32
  }
  func.func @transform_4(%arg0: i32, %arg1: i32) -> (i32, i32) {
    %c0_i32 = arith.constant 0 : i32
    %c0_i32_0 = arith.constant 0 : i32
    %c0_i32_1 = arith.constant 0 : i32
    return %c0_i32, %c0_i32_0 : i32, i32
  }
  func.func @transform_5(%arg0: i32, %arg1: i32) -> (i32, i32) {
    %c0_i32 = arith.constant 0 : i32
    %c0_i32_0 = arith.constant 0 : i32
    %c0_i32_1 = arith.constant 0 : i32
    return %c0_i32, %c0_i32_0 : i32, i32
  }
  func.func @transform_6(%arg0: i32, %arg1: i32) -> (i32, i32) {
    %c0_i32 = arith.constant 0 : i32
    %c0_i32_0 = arith.constant 0 : i32
    %c0_i32_1 = arith.constant 0 : i32
    return %c0_i32, %c0_i32_0 : i32, i32
  }
  func.func @transform_7(%arg0: i32, %arg1: i32) -> (i32, i32) {
    %c0_i32 = arith.constant 0 : i32
    %c0_i32_0 = arith.constant 0 : i32
    %c0_i32_1 = arith.constant 0 : i32
    return %c0_i32, %c0_i32_0 : i32, i32
  }
  func.func @transform_8(%arg0: i32, %arg1: i32) -> (i32, i32) {
    %c0_i32 = arith.constant 0 : i32
    %c0_i32_0 = arith.constant 0 : i32
    %c0_i32_1 = arith.constant 0 : i32
    return %c0_i32, %c0_i32_0 : i32, i32
  }
  func.func @transform_9(%arg0: i32, %arg1: i32) -> (i32, i32, i32) {
    %c0_i32 = arith.constant 0 : i32
    %c0_i32_0 = arith.constant 0 : i32
    return %arg0, %arg1, %c0_i32 : i32, i32, i32
  }
  func.func @transform_10(%arg0: i32, %arg1: i32) -> (i32, i32, i32) {
    %c0_i32 = arith.constant 0 : i32
    %c0_i32_0 = arith.constant 0 : i32
    return %arg0, %arg1, %c0_i32 : i32, i32, i32
  }
  func.func @transform_11(%arg0: i32, %arg1: i32) -> (i32, i32, i32) {
    %c0_i32 = arith.constant 0 : i32
    %c0_i32_0 = arith.constant 0 : i32
    return %arg0, %arg1, %c0_i32 : i32, i32, i32
  }
}

module attributes {stable_mosaic.version = 11 : i64} {
  func.func @attn_mlp_kernel(%arg0: i32, %arg1: i32, %arg2: memref<1x8x32xf32, #tpu.memory_space<vmem>>, %arg3: memref<1x4x8x8xbf16, #tpu.memory_space<vmem>>, %arg4: memref<1x4x8x8xbf16, #tpu.memory_space<vmem>>, %arg5: memref<1x4x8x8xbf16, #tpu.memory_space<vmem>>, %arg6: memref<4x8x32xbf16, #tpu.memory_space<vmem>>, %arg7: memref<1x32xf32, #tpu.memory_space<vmem>>, %arg8: memref<1x32xf32, #tpu.memory_space<vmem>>, %arg9: memref<1x32xf32, #tpu.memory_space<vmem>>, %arg10: memref<32x128xbf16, #tpu.memory_space<vmem>>, %arg11: memref<1x128xf32, #tpu.memory_space<vmem>>, %arg12: memref<128x32xbf16, #tpu.memory_space<vmem>>, %arg13: memref<1x32xf32, #tpu.memory_space<vmem>>, %arg14: memref<1x8x32xf32, #tpu.memory_space<vmem>>) attributes {dimension_semantics = [#tpu.dimension_semantics<parallel>, #tpu.dimension_semantics<parallel>], iteration_bounds = array<i64: 2, 1>, scalar_prefetch = 0 : i64, scratch_operands = 0 : i64, tpu.core_type = #tpu.core_type<tc>, window_params = [{transform_indices = @transform_0, window_bounds = array<i64: 1, 8, 32>}, {transform_indices = @transform_1, window_bounds = array<i64: 1, 4, 8, 8>}, {transform_indices = @transform_2, window_bounds = array<i64: 1, 4, 8, 8>}, {transform_indices = @transform_3, window_bounds = array<i64: 1, 4, 8, 8>}, {pipeline_mode = #tpu.pipeline_mode<synchronous>, transform_indices = @transform_4, window_bounds = array<i64: 4, 8, 32>}, {pipeline_mode = #tpu.pipeline_mode<synchronous>, transform_indices = @transform_5, window_bounds = array<i64: 1, 32>}, {pipeline_mode = #tpu.pipeline_mode<synchronous>, transform_indices = @transform_6, window_bounds = array<i64: 1, 32>}, {pipeline_mode = #tpu.pipeline_mode<synchronous>, transform_indices = @transform_7, window_bounds = array<i64: 1, 32>}, {pipeline_mode = #tpu.pipeline_mode<synchronous>, transform_indices = @transform_8, window_bounds = array<i64: 32, 128>}, {pipeline_mode = #tpu.pipeline_mode<synchronous>, transform_indices = @transform_9, window_bounds = array<i64: 1, 128>}, {pipeline_mode = #tpu.pipeline_mode<synchronous>, transform_indices = @transform_10, window_bounds = array<i64: 128, 32>}, {pipeline_mode = #tpu.pipeline_mode<synchronous>, transform_indices = @transform_11, window_bounds = array<i64: 1, 32>}, {transform_indices = @transform_12, window_bounds = array<i64: 1, 8, 32>}]} {
    %c0 = arith.constant 0 : index
    %c0_0 = arith.constant 0 : index
    %c0_1 = arith.constant 0 : index
    %0 = vector.load %arg2[%c0, %c0_0, %c0_1] : memref<1x8x32xf32, #tpu.memory_space<vmem>>, vector<1x8x32xf32>
    %1 = vector.shape_cast %0 : vector<1x8x32xf32> to vector<8x32xf32>
    %c0_2 = arith.constant 0 : index
    %c0_3 = arith.constant 0 : index
    %c0_4 = arith.constant 0 : index
    %c0_5 = arith.constant 0 : index
    %2 = vector.load %arg3[%c0_2, %c0_3, %c0_4, %c0_5] : memref<1x4x8x8xbf16, #tpu.memory_space<vmem>>, vector<1x4x8x8xbf16>
    %3 = vector.shape_cast %2 : vector<1x4x8x8xbf16> to vector<4x8x8xbf16>
    %c0_6 = arith.constant 0 : index
    %c0_7 = arith.constant 0 : index
    %c0_8 = arith.constant 0 : index
    %c0_9 = arith.constant 0 : index
    %4 = vector.load %arg4[%c0_6, %c0_7, %c0_8, %c0_9] : memref<1x4x8x8xbf16, #tpu.memory_space<vmem>>, vector<1x4x8x8xbf16>
    %5 = vector.shape_cast %4 : vector<1x4x8x8xbf16> to vector<4x8x8xbf16>
    %c0_10 = arith.constant 0 : index
    %c0_11 = arith.constant 0 : index
    %c0_12 = arith.constant 0 : index
    %c0_13 = arith.constant 0 : index
    %6 = vector.load %arg5[%c0_10, %c0_11, %c0_12, %c0_13] : memref<1x4x8x8xbf16, #tpu.memory_space<vmem>>, vector<1x4x8x8xbf16>
    %7 = vector.shape_cast %6 : vector<1x4x8x8xbf16> to vector<4x8x8xbf16>
    "tpu.trace_start"() <{level = 10 : i32, message = "hqd,hkd->hqk"}> : () -> ()
    %cst = arith.constant dense<0.000000e+00> : vector<4x8x8xf32>
    %8 = tpu.matmul %3, %5, %cst {dimension_numbers = #tpu.dot_dimension_numbers<[2], [2], [1], [1], [0, 0, 0, 1, 1, 1], [0], [0]>} : vector<4x8x8xbf16>, vector<4x8x8xbf16>, vector<4x8x8xf32> -> vector<4x8x8xf32>
    "tpu.trace_stop"() : () -> ()
    %cst_14 = arith.constant dense<0xFF800000> : vector<4x8xf32>
    %9 = vector.multi_reduction <maximumf>, %8, %cst_14 [2] : vector<4x8x8xf32> to vector<4x8xf32>
    %10 = vector.shape_cast %9 : vector<4x8xf32> to vector<4x8x1xf32>
    %11 = vector.broadcast %10 : vector<4x8x1xf32> to vector<4x8x8xf32>
    %12 = arith.subf %8, %11 : vector<4x8x8xf32>
    %13 = math.exp %12 : vector<4x8x8xf32>
    %cst_15 = arith.constant dense<0.000000e+00> : vector<4x8xf32>
    %14 = vector.multi_reduction <add>, %13, %cst_15 [2] : vector<4x8x8xf32> to vector<4x8xf32>
    %15 = vector.shape_cast %14 : vector<4x8xf32> to vector<4x8x1xf32>
    %16 = tpu.reciprocal %15 {approx = true} : vector<4x8x1xf32> -> vector<4x8x1xf32>
    %17 = vector.broadcast %16 : vector<4x8x1xf32> to vector<4x8x8xf32>
    %18 = arith.mulf %13, %17 : vector<4x8x8xf32>
    %19 = arith.truncf %18 : vector<4x8x8xf32> to vector<4x8x8xbf16>
    "tpu.trace_start"() <{level = 10 : i32, message = "hqk,hkd->hqd"}> : () -> ()
    %cst_16 = arith.constant dense<0.000000e+00> : vector<4x8x8xf32>
    %20 = tpu.matmul %19, %7, %cst_16 {dimension_numbers = #tpu.dot_dimension_numbers<[2], [1], [1], [2], [0, 0, 0, 1, 1, 2], [0], [0]>} : vector<4x8x8xbf16>, vector<4x8x8xbf16>, vector<4x8x8xf32> -> vector<4x8x8xf32>
    "tpu.trace_stop"() : () -> ()
    %c0_17 = arith.constant 0 : index
    %c0_18 = arith.constant 0 : index
    %c0_19 = arith.constant 0 : index
    %21 = vector.load %arg6[%c0_17, %c0_18, %c0_19] : memref<4x8x32xbf16, #tpu.memory_space<vmem>>, vector<4x8x32xbf16>
    %cst_20 = arith.constant 0.000000e+00 : f32
    %22 = vector.broadcast %cst_20 : f32 to vector<8x32xf32>
    %23 = vector.extract_strided_slice %20 {offsets = [0, 0, 0], sizes = [1, 8, 8], strides = [1, 1, 1]} : vector<4x8x8xf32> to vector<1x8x8xf32>
    %24 = vector.shape_cast %23 : vector<1x8x8xf32> to vector<8x8xf32>
    %25 = arith.truncf %24 : vector<8x8xf32> to vector<8x8xbf16>
    %26 = vector.extract_strided_slice %21 {offsets = [0, 0, 0], sizes = [1, 8, 32], strides = [1, 1, 1]} : vector<4x8x32xbf16> to vector<1x8x32xbf16>
    %27 = vector.shape_cast %26 : vector<1x8x32xbf16> to vector<8x32xbf16>
    %cst_21 = arith.constant dense<0.000000e+00> : vector<8x32xf32>
    %28 = tpu.matmul %25, %27, %cst_21 {dimension_numbers = #tpu.dot_dimension_numbers<[1], [0], [0], [1], [0, 0, 1, 1], [], []>} : vector<8x8xbf16>, vector<8x32xbf16>, vector<8x32xf32> -> vector<8x32xf32>
    %29 = arith.addf %22, %28 : vector<8x32xf32>
    %30 = vector.extract_strided_slice %20 {offsets = [1, 0, 0], sizes = [1, 8, 8], strides = [1, 1, 1]} : vector<4x8x8xf32> to vector<1x8x8xf32>
    %31 = vector.shape_cast %30 : vector<1x8x8xf32> to vector<8x8xf32>
    %32 = arith.truncf %31 : vector<8x8xf32> to vector<8x8xbf16>
    %33 = vector.extract_strided_slice %21 {offsets = [1, 0, 0], sizes = [1, 8, 32], strides = [1, 1, 1]} : vector<4x8x32xbf16> to vector<1x8x32xbf16>
    %34 = vector.shape_cast %33 : vector<1x8x32xbf16> to vector<8x32xbf16>
    %cst_22 = arith.constant dense<0.000000e+00> : vector<8x32xf32>
    %35 = tpu.matmul %32, %34, %cst_22 {dimension_numbers = #tpu.dot_dimension_numbers<[1], [0], [0], [1], [0, 0, 1, 1], [], []>} : vector<8x8xbf16>, vector<8x32xbf16>, vector<8x32xf32> -> vector<8x32xf32>
    %36 = arith.addf %29, %35 : vector<8x32xf32>
    %37 = vector.extract_strided_slice %20 {offsets = [2, 0, 0], sizes = [1, 8, 8], strides = [1, 1, 1]} : vector<4x8x8xf32> to vector<1x8x8xf32>
    %38 = vector.shape_cast %37 : vector<1x8x8xf32> to vector<8x8xf32>
    %39 = arith.truncf %38 : vector<8x8xf32> to vector<8x8xbf16>
    %40 = vector.extract_strided_slice %21 {offsets = [2, 0, 0], sizes = [1, 8, 32], strides = [1, 1, 1]} : vector<4x8x32xbf16> to vector<1x8x32xbf16>
    %41 = vector.shape_cast %40 : vector<1x8x32xbf16> to vector<8x32xbf16>
    %cst_23 = arith.constant dense<0.000000e+00> : vector<8x32xf32>
    %42 = tpu.matmul %39, %41, %cst_23 {dimension_numbers = #tpu.dot_dimension_numbers<[1], [0], [0], [1], [0, 0, 1, 1], [], []>} : vector<8x8xbf16>, vector<8x32xbf16>, vector<8x32xf32> -> vector<8x32xf32>
    %43 = arith.addf %36, %42 : vector<8x32xf32>
    %44 = vector.extract_strided_slice %20 {offsets = [3, 0, 0], sizes = [1, 8, 8], strides = [1, 1, 1]} : vector<4x8x8xf32> to vector<1x8x8xf32>
    %45 = vector.shape_cast %44 : vector<1x8x8xf32> to vector<8x8xf32>
    %46 = arith.truncf %45 : vector<8x8xf32> to vector<8x8xbf16>
    %47 = vector.extract_strided_slice %21 {offsets = [3, 0, 0], sizes = [1, 8, 32], strides = [1, 1, 1]} : vector<4x8x32xbf16> to vector<1x8x32xbf16>
    %48 = vector.shape_cast %47 : vector<1x8x32xbf16> to vector<8x32xbf16>
    %cst_24 = arith.constant dense<0.000000e+00> : vector<8x32xf32>
    %49 = tpu.matmul %46, %48, %cst_24 {dimension_numbers = #tpu.dot_dimension_numbers<[1], [0], [0], [1], [0, 0, 1, 1], [], []>} : vector<8x8xbf16>, vector<8x32xbf16>, vector<8x32xf32> -> vector<8x32xf32>
    %50 = arith.addf %43, %49 : vector<8x32xf32>
    %51 = arith.addf %1, %50 : vector<8x32xf32>
    %c0_25 = arith.constant 0 : index
    %c0_26 = arith.constant 0 : index
    %52 = vector.load %arg7[%c0_25, %c0_26] : memref<1x32xf32, #tpu.memory_space<vmem>>, vector<1x32xf32>
    %53 = vector.broadcast %52 : vector<1x32xf32> to vector<8x32xf32>
    %54 = arith.addf %51, %53 : vector<8x32xf32>
    %c0_27 = arith.constant 0 : index
    %c0_28 = arith.constant 0 : index
    %55 = vector.load %arg8[%c0_27, %c0_28] : memref<1x32xf32, #tpu.memory_space<vmem>>, vector<1x32xf32>
    %c0_29 = arith.constant 0 : index
    %c0_30 = arith.constant 0 : index
    %56 = vector.load %arg9[%c0_29, %c0_30] : memref<1x32xf32, #tpu.memory_space<vmem>>, vector<1x32xf32>
    %cst_31 = arith.constant dense<0.000000e+00> : vector<8xf32>
    %57 = vector.multi_reduction <add>, %54, %cst_31 [1] : vector<8x32xf32> to vector<8xf32>
    %58 = vector.shape_cast %57 : vector<8xf32> to vector<8x1xf32>
    %cst_32 = arith.constant 3.200000e+01 : f32
    %59 = vector.broadcast %cst_32 : f32 to vector<8x1xf32>
    %60 = arith.divf %58, %59 : vector<8x1xf32>
    %61 = vector.broadcast %60 : vector<8x1xf32> to vector<8x32xf32>
    %62 = arith.subf %54, %61 : vector<8x32xf32>
    %63 = arith.mulf %62, %62 : vector<8x32xf32>
    %cst_33 = arith.constant dense<0.000000e+00> : vector<8xf32>
    %64 = vector.multi_reduction <add>, %63, %cst_33 [1] : vector<8x32xf32> to vector<8xf32>
    %65 = vector.shape_cast %64 : vector<8xf32> to vector<8x1xf32>
    %cst_34 = arith.constant 3.200000e+01 : f32
    %66 = vector.broadcast %cst_34 : f32 to vector<8x1xf32>
    %67 = arith.divf %65, %66 : vector<8x1xf32>
    %68 = vector.broadcast %60 : vector<8x1xf32> to vector<8x32xf32>
    %69 = arith.subf %54, %68 : vector<8x32xf32>
    %cst_35 = arith.constant 9.99999974E-6 : f32
    %70 = vector.broadcast %cst_35 : f32 to vector<8x1xf32>
    %71 = arith.addf %67, %70 : vector<8x1xf32>
    %72 = math.rsqrt %71 : vector<8x1xf32>
    %73 = vector.broadcast %72 : vector<8x1xf32> to vector<8x32xf32>
    %74 = arith.mulf %69, %73 : vector<8x32xf32>
    %75 = vector.broadcast %55 : vector<1x32xf32> to vector<8x32xf32>
    %76 = arith.mulf %74, %75 : vector<8x32xf32>
    %77 = vector.broadcast %56 : vector<1x32xf32> to vector<8x32xf32>
    %78 = arith.addf %76, %77 : vector<8x32xf32>
    %79 = arith.truncf %78 : vector<8x32xf32> to vector<8x32xbf16>
    %c0_36 = arith.constant 0 : index
    %c0_37 = arith.constant 0 : index
    %80 = vector.load %arg10[%c0_36, %c0_37] : memref<32x128xbf16, #tpu.memory_space<vmem>>, vector<32x128xbf16>
    %cst_38 = arith.constant dense<0.000000e+00> : vector<8x128xf32>
    %81 = tpu.matmul %79, %80, %cst_38 {dimension_numbers = #tpu.dot_dimension_numbers<[1], [0], [0], [1], [0, 0, 1, 1], [], []>} : vector<8x32xbf16>, vector<32x128xbf16>, vector<8x128xf32> -> vector<8x128xf32>
    %c0_39 = arith.constant 0 : index
    %c0_40 = arith.constant 0 : index
    %82 = vector.load %arg11[%c0_39, %c0_40] : memref<1x128xf32, #tpu.memory_space<vmem>>, vector<1x128xf32>
    %83 = vector.broadcast %82 : vector<1x128xf32> to vector<8x128xf32>
    %84 = arith.addf %81, %83 : vector<8x128xf32>
    %85 = arith.mulf %84, %84 : vector<8x128xf32>
    %86 = arith.mulf %84, %85 : vector<8x128xf32>
    %cst_41 = arith.constant 4.471500e-02 : f32
    %87 = vector.broadcast %cst_41 : f32 to vector<8x128xf32>
    %88 = arith.mulf %87, %86 : vector<8x128xf32>
    %89 = arith.addf %84, %88 : vector<8x128xf32>
    %cst_42 = arith.constant 0.797884583 : f32
    %90 = vector.broadcast %cst_42 : f32 to vector<8x128xf32>
    %91 = arith.mulf %90, %89 : vector<8x128xf32>
    %92 = math.tanh %91 : vector<8x128xf32>
    %cst_43 = arith.constant 1.000000e+00 : f32
    %93 = vector.broadcast %cst_43 : f32 to vector<8x128xf32>
    %94 = arith.addf %93, %92 : vector<8x128xf32>
    %cst_44 = arith.constant 5.000000e-01 : f32
    %95 = vector.broadcast %cst_44 : f32 to vector<8x128xf32>
    %96 = arith.mulf %95, %94 : vector<8x128xf32>
    %97 = arith.mulf %84, %96 : vector<8x128xf32>
    %98 = arith.truncf %97 : vector<8x128xf32> to vector<8x128xbf16>
    %c0_45 = arith.constant 0 : index
    %c0_46 = arith.constant 0 : index
    %99 = vector.load %arg12[%c0_45, %c0_46] : memref<128x32xbf16, #tpu.memory_space<vmem>>, vector<128x32xbf16>
    %cst_47 = arith.constant dense<0.000000e+00> : vector<8x32xf32>
    %100 = tpu.matmul %98, %99, %cst_47 {dimension_numbers = #tpu.dot_dimension_numbers<[1], [0], [0], [1], [0, 0, 1, 1], [], []>} : vector<8x128xbf16>, vector<128x32xbf16>, vector<8x32xf32> -> vector<8x32xf32>
    %c0_48 = arith.constant 0 : index
    %c0_49 = arith.constant 0 : index
    %101 = vector.load %arg13[%c0_48, %c0_49] : memref<1x32xf32, #tpu.memory_space<vmem>>, vector<1x32xf32>
    %102 = vector.broadcast %101 : vector<1x32xf32> to vector<8x32xf32>
    %103 = arith.addf %100, %102 : vector<8x32xf32>
    %104 = arith.addf %54, %103 : vector<8x32xf32>
    %c0_50 = arith.constant 0 : index
    %c0_51 = arith.constant 0 : index
    %c0_52 = arith.constant 0 : index
    %105 = vector.load %arg14[%c0_50, %c0_51, %c0_52] : memref<1x8x32xf32, #tpu.memory_space<vmem>>, vector<1x8x32xf32>
    %106 = vector.shape_cast %105 : vector<1x8x32xf32> to vector<8x32xf32>
    %107 = vector.shape_cast %104 : vector<8x32xf32> to vector<1x8x32xf32>
    tpu.vector_store %arg14[%c0_50, %c0_51, %c0_52], %107 {strides = array<i32>} : memref<1x8x32xf32, #tpu.memory_space<vmem>>, vector<1x8x32xf32>,
    return
  }
  func.func @transform_0(%arg0: i32, %arg1: i32) -> (i32, i32, i32) {
    %c0_i32 = arith.constant 0 : i32
    %c0_i32_0 = arith.constant 0 : i32
    return %arg0, %arg1, %c0_i32 : i32, i32, i32
  }
  func.func @transform_1(%arg0: i32, %arg1: i32) -> (i32, i32, i32, i32) {
    %c0_i32 = arith.constant 0 : i32
    %c0_i32_0 = arith.constant 0 : i32
    %c0_i32_1 = arith.constant 0 : i32
    return %arg0, %c0_i32, %arg1, %c0_i32_0 : i32, i32, i32, i32
  }
  func.func @transform_2(%arg0: i32, %arg1: i32) -> (i32, i32, i32, i32) {
    %c0_i32 = arith.constant 0 : i32
    %c0_i32_0 = arith.constant 0 : i32
    %c0_i32_1 = arith.constant 0 : i32
    %c0_i32_2 = arith.constant 0 : i32
    return %arg0, %c0_i32, %c0_i32_0, %c0_i32_1 : i32, i32, i32, i32
  }
  func.func @transform_3(%arg0: i32, %arg1: i32) -> (i32, i32, i32, i32) {
    %c0_i32 = arith.constant 0 : i32
    %c0_i32_0 = arith.constant 0 : i32
    %c0_i32_1 = arith.constant 0 : i32
    %c0_i32_2 = arith.constant 0 : i32
    return %arg0, %c0_i32, %c0_i32_0, %c0_i32_1 : i32, i32, i32, i32
  }
  func.func @transform_4(%arg0: i32, %arg1: i32) -> (i32, i32, i32) {
    %c0_i32 = arith.constant 0 : i32
    %c0_i32_0 = arith.constant 0 : i32
    %c0_i32_1 = arith.constant 0 : i32
    %c0_i32_2 = arith.constant 0 : i32
    return %c0_i32, %c0_i32_0, %c0_i32_1 : i32, i32, i32
  }
  func.func @transform_5(%arg0: i32, %arg1: i32) -> (i32, i32) {
    %c0_i32 = arith.constant 0 : i32
    %c0_i32_0 = arith.constant 0 : i32
    %c0_i32_1 = arith.constant 0 : i32
    return %c0_i32, %c0_i32_0 : i32, i32
  }
  func.func @transform_6(%arg0: i32, %arg1: i32) -> (i32, i32) {
    %c0_i32 = arith.constant 0 : i32
    %c0_i32_0 = arith.constant 0 : i32
    %c0_i32_1 = arith.constant 0 : i32
    return %c0_i32, %c0_i32_0 : i32, i32
  }
  func.func @transform_7(%arg0: i32, %arg1: i32) -> (i32, i32) {
    %c0_i32 = arith.constant 0 : i32
    %c0_i32_0 = arith.constant 0 : i32
    %c0_i32_1 = arith.constant 0 : i32
    return %c0_i32, %c0_i32_0 : i32, i32
  }
  func.func @transform_8(%arg0: i32, %arg1: i32) -> (i32, i32) {
    %c0_i32 = arith.constant 0 : i32
    %c0_i32_0 = arith.constant 0 : i32
    %c0_i32_1 = arith.constant 0 : i32
    return %c0_i32, %c0_i32_0 : i32, i32
  }
  func.func @transform_9(%arg0: i32, %arg1: i32) -> (i32, i32) {
    %c0_i32 = arith.constant 0 : i32
    %c0_i32_0 = arith.constant 0 : i32
    %c0_i32_1 = arith.constant 0 : i32
    return %c0_i32, %c0_i32_0 : i32, i32
  }
  func.func @transform_10(%arg0: i32, %arg1: i32) -> (i32, i32) {
    %c0_i32 = arith.constant 0 : i32
    %c0_i32_0 = arith.constant 0 : i32
    %c0_i32_1 = arith.constant 0 : i32
    return %c0_i32, %c0_i32_0 : i32, i32
  }
  func.func @transform_11(%arg0: i32, %arg1: i32) -> (i32, i32) {
    %c0_i32 = arith.constant 0 : i32
    %c0_i32_0 = arith.constant 0 : i32
    %c0_i32_1 = arith.constant 0 : i32
    return %c0_i32, %c0_i32_0 : i32, i32
  }
  func.func @transform_12(%arg0: i32, %arg1: i32) -> (i32, i32, i32) {
    %c0_i32 = arith.constant 0 : i32
    %c0_i32_0 = arith.constant 0 : i32
    return %arg0, %arg1, %c0_i32 : i32, i32, i32
  }
}

module attributes {stable_mosaic.version = 11 : i64} {
  func.func @attn_mlp_kernel(%arg0: i32, %arg1: i32, %arg2: memref<1x8x32xf32, #tpu.memory_space<vmem>>, %arg3: memref<1x4x8x8xbf16, #tpu.memory_space<vmem>>, %arg4: memref<1x4x8x8xbf16, #tpu.memory_space<vmem>>, %arg5: memref<1x4x8x8xbf16, #tpu.memory_space<vmem>>, %arg6: memref<4x8x32xbf16, #tpu.memory_space<vmem>>, %arg7: memref<1x32xf32, #tpu.memory_space<vmem>>, %arg8: memref<1x32xf32, #tpu.memory_space<vmem>>, %arg9: memref<1x32xf32, #tpu.memory_space<vmem>>, %arg10: memref<32x128xbf16, #tpu.memory_space<vmem>>, %arg11: memref<1x128xf32, #tpu.memory_space<vmem>>, %arg12: memref<128x32xbf16, #tpu.memory_space<vmem>>, %arg13: memref<1x32xf32, #tpu.memory_space<vmem>>, %arg14: memref<1x32xf32, #tpu.memory_space<vmem>>, %arg15: memref<1x32xf32, #tpu.memory_space<vmem>>, %arg16: memref<1x8x32xf32, #tpu.memory_space<vmem>>) attributes {dimension_semantics = [#tpu.dimension_semantics<parallel>, #tpu.dimension_semantics<parallel>], iteration_bounds = array<i64: 2, 1>, scalar_prefetch = 0 : i64, scratch_operands = 0 : i64, tpu.core_type = #tpu.core_type<tc>, window_params = [{transform_indices = @transform_0, window_bounds = array<i64: 1, 8, 32>}, {transform_indices = @transform_1, window_bounds = array<i64: 1, 4, 8, 8>}, {transform_indices = @transform_2, window_bounds = array<i64: 1, 4, 8, 8>}, {transform_indices = @transform_3, window_bounds = array<i64: 1, 4, 8, 8>}, {pipeline_mode = #tpu.pipeline_mode<synchronous>, transform_indices = @transform_4, window_bounds = array<i64: 4, 8, 32>}, {pipeline_mode = #tpu.pipeline_mode<synchronous>, transform_indices = @transform_5, window_bounds = array<i64: 1, 32>}, {pipeline_mode = #tpu.pipeline_mode<synchronous>, transform_indices = @transform_6, window_bounds = array<i64: 1, 32>}, {pipeline_mode = #tpu.pipeline_mode<synchronous>, transform_indices = @transform_7, window_bounds = array<i64: 1, 32>}, {pipeline_mode = #tpu.pipeline_mode<synchronous>, transform_indices = @transform_8, window_bounds = array<i64: 32, 128>}, {pipeline_mode = #tpu.pipeline_mode<synchronous>, transform_indices = @transform_9, window_bounds = array<i64: 1, 128>}, {pipeline_mode = #tpu.pipeline_mode<synchronous>, transform_indices = @transform_10, window_bounds = array<i64: 128, 32>}, {pipeline_mode = #tpu.pipeline_mode<synchronous>, transform_indices = @transform_11, window_bounds = array<i64: 1, 32>}, {pipeline_mode = #tpu.pipeline_mode<synchronous>, transform_indices = @transform_12, window_bounds = array<i64: 1, 32>}, {pipeline_mode = #tpu.pipeline_mode<synchronous>, transform_indices = @transform_13, window_bounds = array<i64: 1, 32>}, {transform_indices = @transform_14, window_bounds = array<i64: 1, 8, 32>}]} {
    %c0 = arith.constant 0 : index
    %c0_0 = arith.constant 0 : index
    %c0_1 = arith.constant 0 : index
    %0 = vector.load %arg2[%c0, %c0_0, %c0_1] : memref<1x8x32xf32, #tpu.memory_space<vmem>>, vector<1x8x32xf32>
    %1 = vector.shape_cast %0 : vector<1x8x32xf32> to vector<8x32xf32>
    %c0_2 = arith.constant 0 : index
    %c0_3 = arith.constant 0 : index
    %c0_4 = arith.constant 0 : index
    %c0_5 = arith.constant 0 : index
    %2 = vector.load %arg3[%c0_2, %c0_3, %c0_4, %c0_5] : memref<1x4x8x8xbf16, #tpu.memory_space<vmem>>, vector<1x4x8x8xbf16>
    %3 = vector.shape_cast %2 : vector<1x4x8x8xbf16> to vector<4x8x8xbf16>
    %c0_6 = arith.constant 0 : index
    %c0_7 = arith.constant 0 : index
    %c0_8 = arith.constant 0 : index
    %c0_9 = arith.constant 0 : index
    %4 = vector.load %arg4[%c0_6, %c0_7, %c0_8, %c0_9] : memref<1x4x8x8xbf16, #tpu.memory_space<vmem>>, vector<1x4x8x8xbf16>
    %5 = vector.shape_cast %4 : vector<1x4x8x8xbf16> to vector<4x8x8xbf16>
    %c0_10 = arith.constant 0 : index
    %c0_11 = arith.constant 0 : index
    %c0_12 = arith.constant 0 : index
    %c0_13 = arith.constant 0 : index
    %6 = vector.load %arg5[%c0_10, %c0_11, %c0_12, %c0_13] : memref<1x4x8x8xbf16, #tpu.memory_space<vmem>>, vector<1x4x8x8xbf16>
    %7 = vector.shape_cast %6 : vector<1x4x8x8xbf16> to vector<4x8x8xbf16>
    "tpu.trace_start"() <{level = 10 : i32, message = "hqd,hkd->hqk"}> : () -> ()
    %cst = arith.constant dense<0.000000e+00> : vector<4x8x8xf32>
    %8 = tpu.matmul %3, %5, %cst {dimension_numbers = #tpu.dot_dimension_numbers<[2], [2], [1], [1], [0, 0, 0, 1, 1, 1], [0], [0]>} : vector<4x8x8xbf16>, vector<4x8x8xbf16>, vector<4x8x8xf32> -> vector<4x8x8xf32>
    "tpu.trace_stop"() : () -> ()
    %cst_14 = arith.constant dense<0xFF800000> : vector<4x8xf32>
    %9 = vector.multi_reduction <maximumf>, %8, %cst_14 [2] : vector<4x8x8xf32> to vector<4x8xf32>
    %10 = vector.shape_cast %9 : vector<4x8xf32> to vector<4x8x1xf32>
    %11 = vector.broadcast %10 : vector<4x8x1xf32> to vector<4x8x8xf32>
    %12 = arith.subf %8, %11 : vector<4x8x8xf32>
    %13 = math.exp %12 : vector<4x8x8xf32>
    %cst_15 = arith.constant dense<0.000000e+00> : vector<4x8xf32>
    %14 = vector.multi_reduction <add>, %13, %cst_15 [2] : vector<4x8x8xf32> to vector<4x8xf32>
    %15 = vector.shape_cast %14 : vector<4x8xf32> to vector<4x8x1xf32>
    %16 = tpu.reciprocal %15 {approx = true} : vector<4x8x1xf32> -> vector<4x8x1xf32>
    %17 = vector.broadcast %16 : vector<4x8x1xf32> to vector<4x8x8xf32>
    %18 = arith.mulf %13, %17 : vector<4x8x8xf32>
    %19 = arith.truncf %18 : vector<4x8x8xf32> to vector<4x8x8xbf16>
    "tpu.trace_start"() <{level = 10 : i32, message = "hqk,hkd->hqd"}> : () -> ()
    %cst_16 = arith.constant dense<0.000000e+00> : vector<4x8x8xf32>
    %20 = tpu.matmul %19, %7, %cst_16 {dimension_numbers = #tpu.dot_dimension_numbers<[2], [1], [1], [2], [0, 0, 0, 1, 1, 2], [0], [0]>} : vector<4x8x8xbf16>, vector<4x8x8xbf16>, vector<4x8x8xf32> -> vector<4x8x8xf32>
    "tpu.trace_stop"() : () -> ()
    %c0_17 = arith.constant 0 : index
    %c0_18 = arith.constant 0 : index
    %c0_19 = arith.constant 0 : index
    %21 = vector.load %arg6[%c0_17, %c0_18, %c0_19] : memref<4x8x32xbf16, #tpu.memory_space<vmem>>, vector<4x8x32xbf16>
    %cst_20 = arith.constant 0.000000e+00 : f32
    %22 = vector.broadcast %cst_20 : f32 to vector<8x32xf32>
    %23 = vector.extract_strided_slice %20 {offsets = [0, 0, 0], sizes = [1, 8, 8], strides = [1, 1, 1]} : vector<4x8x8xf32> to vector<1x8x8xf32>
    %24 = vector.shape_cast %23 : vector<1x8x8xf32> to vector<8x8xf32>
    %25 = arith.truncf %24 : vector<8x8xf32> to vector<8x8xbf16>
    %26 = vector.extract_strided_slice %21 {offsets = [0, 0, 0], sizes = [1, 8, 32], strides = [1, 1, 1]} : vector<4x8x32xbf16> to vector<1x8x32xbf16>
    %27 = vector.shape_cast %26 : vector<1x8x32xbf16> to vector<8x32xbf16>
    %cst_21 = arith.constant dense<0.000000e+00> : vector<8x32xf32>
    %28 = tpu.matmul %25, %27, %cst_21 {dimension_numbers = #tpu.dot_dimension_numbers<[1], [0], [0], [1], [0, 0, 1, 1], [], []>} : vector<8x8xbf16>, vector<8x32xbf16>, vector<8x32xf32> -> vector<8x32xf32>
    %29 = arith.addf %22, %28 : vector<8x32xf32>
    %30 = vector.extract_strided_slice %20 {offsets = [1, 0, 0], sizes = [1, 8, 8], strides = [1, 1, 1]} : vector<4x8x8xf32> to vector<1x8x8xf32>
    %31 = vector.shape_cast %30 : vector<1x8x8xf32> to vector<8x8xf32>
    %32 = arith.truncf %31 : vector<8x8xf32> to vector<8x8xbf16>
    %33 = vector.extract_strided_slice %21 {offsets = [1, 0, 0], sizes = [1, 8, 32], strides = [1, 1, 1]} : vector<4x8x32xbf16> to vector<1x8x32xbf16>
    %34 = vector.shape_cast %33 : vector<1x8x32xbf16> to vector<8x32xbf16>
    %cst_22 = arith.constant dense<0.000000e+00> : vector<8x32xf32>
    %35 = tpu.matmul %32, %34, %cst_22 {dimension_numbers = #tpu.dot_dimension_numbers<[1], [0], [0], [1], [0, 0, 1, 1], [], []>} : vector<8x8xbf16>, vector<8x32xbf16>, vector<8x32xf32> -> vector<8x32xf32>
    %36 = arith.addf %29, %35 : vector<8x32xf32>
    %37 = vector.extract_strided_slice %20 {offsets = [2, 0, 0], sizes = [1, 8, 8], strides = [1, 1, 1]} : vector<4x8x8xf32> to vector<1x8x8xf32>
    %38 = vector.shape_cast %37 : vector<1x8x8xf32> to vector<8x8xf32>
    %39 = arith.truncf %38 : vector<8x8xf32> to vector<8x8xbf16>
    %40 = vector.extract_strided_slice %21 {offsets = [2, 0, 0], sizes = [1, 8, 32], strides = [1, 1, 1]} : vector<4x8x32xbf16> to vector<1x8x32xbf16>
    %41 = vector.shape_cast %40 : vector<1x8x32xbf16> to vector<8x32xbf16>
    %cst_23 = arith.constant dense<0.000000e+00> : vector<8x32xf32>
    %42 = tpu.matmul %39, %41, %cst_23 {dimension_numbers = #tpu.dot_dimension_numbers<[1], [0], [0], [1], [0, 0, 1, 1], [], []>} : vector<8x8xbf16>, vector<8x32xbf16>, vector<8x32xf32> -> vector<8x32xf32>
    %43 = arith.addf %36, %42 : vector<8x32xf32>
    %44 = vector.extract_strided_slice %20 {offsets = [3, 0, 0], sizes = [1, 8, 8], strides = [1, 1, 1]} : vector<4x8x8xf32> to vector<1x8x8xf32>
    %45 = vector.shape_cast %44 : vector<1x8x8xf32> to vector<8x8xf32>
    %46 = arith.truncf %45 : vector<8x8xf32> to vector<8x8xbf16>
    %47 = vector.extract_strided_slice %21 {offsets = [3, 0, 0], sizes = [1, 8, 32], strides = [1, 1, 1]} : vector<4x8x32xbf16> to vector<1x8x32xbf16>
    %48 = vector.shape_cast %47 : vector<1x8x32xbf16> to vector<8x32xbf16>
    %cst_24 = arith.constant dense<0.000000e+00> : vector<8x32xf32>
    %49 = tpu.matmul %46, %48, %cst_24 {dimension_numbers = #tpu.dot_dimension_numbers<[1], [0], [0], [1], [0, 0, 1, 1], [], []>} : vector<8x8xbf16>, vector<8x32xbf16>, vector<8x32xf32> -> vector<8x32xf32>
    %50 = arith.addf %43, %49 : vector<8x32xf32>
    %51 = arith.addf %1, %50 : vector<8x32xf32>
    %c0_25 = arith.constant 0 : index
    %c0_26 = arith.constant 0 : index
    %52 = vector.load %arg7[%c0_25, %c0_26] : memref<1x32xf32, #tpu.memory_space<vmem>>, vector<1x32xf32>
    %53 = vector.broadcast %52 : vector<1x32xf32> to vector<8x32xf32>
    %54 = arith.addf %51, %53 : vector<8x32xf32>
    %c0_27 = arith.constant 0 : index
    %c0_28 = arith.constant 0 : index
    %55 = vector.load %arg8[%c0_27, %c0_28] : memref<1x32xf32, #tpu.memory_space<vmem>>, vector<1x32xf32>
    %c0_29 = arith.constant 0 : index
    %c0_30 = arith.constant 0 : index
    %56 = vector.load %arg9[%c0_29, %c0_30] : memref<1x32xf32, #tpu.memory_space<vmem>>, vector<1x32xf32>
    %cst_31 = arith.constant dense<0.000000e+00> : vector<8xf32>
    %57 = vector.multi_reduction <add>, %54, %cst_31 [1] : vector<8x32xf32> to vector<8xf32>
    %58 = vector.shape_cast %57 : vector<8xf32> to vector<8x1xf32>
    %cst_32 = arith.constant 3.200000e+01 : f32
    %59 = vector.broadcast %cst_32 : f32 to vector<8x1xf32>
    %60 = arith.divf %58, %59 : vector<8x1xf32>
    %61 = vector.broadcast %60 : vector<8x1xf32> to vector<8x32xf32>
    %62 = arith.subf %54, %61 : vector<8x32xf32>
    %63 = arith.mulf %62, %62 : vector<8x32xf32>
    %cst_33 = arith.constant dense<0.000000e+00> : vector<8xf32>
    %64 = vector.multi_reduction <add>, %63, %cst_33 [1] : vector<8x32xf32> to vector<8xf32>
    %65 = vector.shape_cast %64 : vector<8xf32> to vector<8x1xf32>
    %cst_34 = arith.constant 3.200000e+01 : f32
    %66 = vector.broadcast %cst_34 : f32 to vector<8x1xf32>
    %67 = arith.divf %65, %66 : vector<8x1xf32>
    %68 = vector.broadcast %60 : vector<8x1xf32> to vector<8x32xf32>
    %69 = arith.subf %54, %68 : vector<8x32xf32>
    %cst_35 = arith.constant 9.99999974E-6 : f32
    %70 = vector.broadcast %cst_35 : f32 to vector<8x1xf32>
    %71 = arith.addf %67, %70 : vector<8x1xf32>
    %72 = math.rsqrt %71 : vector<8x1xf32>
    %73 = vector.broadcast %72 : vector<8x1xf32> to vector<8x32xf32>
    %74 = arith.mulf %69, %73 : vector<8x32xf32>
    %75 = vector.broadcast %55 : vector<1x32xf32> to vector<8x32xf32>
    %76 = arith.mulf %74, %75 : vector<8x32xf32>
    %77 = vector.broadcast %56 : vector<1x32xf32> to vector<8x32xf32>
    %78 = arith.addf %76, %77 : vector<8x32xf32>
    %79 = arith.truncf %78 : vector<8x32xf32> to vector<8x32xbf16>
    %c0_36 = arith.constant 0 : index
    %c0_37 = arith.constant 0 : index
    %80 = vector.load %arg10[%c0_36, %c0_37] : memref<32x128xbf16, #tpu.memory_space<vmem>>, vector<32x128xbf16>
    %cst_38 = arith.constant dense<0.000000e+00> : vector<8x128xf32>
    %81 = tpu.matmul %79, %80, %cst_38 {dimension_numbers = #tpu.dot_dimension_numbers<[1], [0], [0], [1], [0, 0, 1, 1], [], []>} : vector<8x32xbf16>, vector<32x128xbf16>, vector<8x128xf32> -> vector<8x128xf32>
    %c0_39 = arith.constant 0 : index
    %c0_40 = arith.constant 0 : index
    %82 = vector.load %arg11[%c0_39, %c0_40] : memref<1x128xf32, #tpu.memory_space<vmem>>, vector<1x128xf32>
    %83 = vector.broadcast %82 : vector<1x128xf32> to vector<8x128xf32>
    %84 = arith.addf %81, %83 : vector<8x128xf32>
    %85 = arith.mulf %84, %84 : vector<8x128xf32>
    %86 = arith.mulf %84, %85 : vector<8x128xf32>
    %cst_41 = arith.constant 4.471500e-02 : f32
    %87 = vector.broadcast %cst_41 : f32 to vector<8x128xf32>
    %88 = arith.mulf %87, %86 : vector<8x128xf32>
    %89 = arith.addf %84, %88 : vector<8x128xf32>
    %cst_42 = arith.constant 0.797884583 : f32
    %90 = vector.broadcast %cst_42 : f32 to vector<8x128xf32>
    %91 = arith.mulf %90, %89 : vector<8x128xf32>
    %92 = math.tanh %91 : vector<8x128xf32>
    %cst_43 = arith.constant 1.000000e+00 : f32
    %93 = vector.broadcast %cst_43 : f32 to vector<8x128xf32>
    %94 = arith.addf %93, %92 : vector<8x128xf32>
    %cst_44 = arith.constant 5.000000e-01 : f32
    %95 = vector.broadcast %cst_44 : f32 to vector<8x128xf32>
    %96 = arith.mulf %95, %94 : vector<8x128xf32>
    %97 = arith.mulf %84, %96 : vector<8x128xf32>
    %98 = arith.truncf %97 : vector<8x128xf32> to vector<8x128xbf16>
    %c0_45 = arith.constant 0 : index
    %c0_46 = arith.constant 0 : index
    %99 = vector.load %arg12[%c0_45, %c0_46] : memref<128x32xbf16, #tpu.memory_space<vmem>>, vector<128x32xbf16>
    %cst_47 = arith.constant dense<0.000000e+00> : vector<8x32xf32>
    %100 = tpu.matmul %98, %99, %cst_47 {dimension_numbers = #tpu.dot_dimension_numbers<[1], [0], [0], [1], [0, 0, 1, 1], [], []>} : vector<8x128xbf16>, vector<128x32xbf16>, vector<8x32xf32> -> vector<8x32xf32>
    %c0_48 = arith.constant 0 : index
    %c0_49 = arith.constant 0 : index
    %101 = vector.load %arg13[%c0_48, %c0_49] : memref<1x32xf32, #tpu.memory_space<vmem>>, vector<1x32xf32>
    %102 = vector.broadcast %101 : vector<1x32xf32> to vector<8x32xf32>
    %103 = arith.addf %100, %102 : vector<8x32xf32>
    %104 = arith.addf %54, %103 : vector<8x32xf32>
    %c0_50 = arith.constant 0 : index
    %c0_51 = arith.constant 0 : index
    %105 = vector.load %arg14[%c0_50, %c0_51] : memref<1x32xf32, #tpu.memory_space<vmem>>, vector<1x32xf32>
    %c0_52 = arith.constant 0 : index
    %c0_53 = arith.constant 0 : index
    %106 = vector.load %arg15[%c0_52, %c0_53] : memref<1x32xf32, #tpu.memory_space<vmem>>, vector<1x32xf32>
    %cst_54 = arith.constant dense<0.000000e+00> : vector<8xf32>
    %107 = vector.multi_reduction <add>, %104, %cst_54 [1] : vector<8x32xf32> to vector<8xf32>
    %108 = vector.shape_cast %107 : vector<8xf32> to vector<8x1xf32>
    %cst_55 = arith.constant 3.200000e+01 : f32
    %109 = vector.broadcast %cst_55 : f32 to vector<8x1xf32>
    %110 = arith.divf %108, %109 : vector<8x1xf32>
    %111 = vector.broadcast %110 : vector<8x1xf32> to vector<8x32xf32>
    %112 = arith.subf %104, %111 : vector<8x32xf32>
    %113 = arith.mulf %112, %112 : vector<8x32xf32>
    %cst_56 = arith.constant dense<0.000000e+00> : vector<8xf32>
    %114 = vector.multi_reduction <add>, %113, %cst_56 [1] : vector<8x32xf32> to vector<8xf32>
    %115 = vector.shape_cast %114 : vector<8xf32> to vector<8x1xf32>
    %cst_57 = arith.constant 3.200000e+01 : f32
    %116 = vector.broadcast %cst_57 : f32 to vector<8x1xf32>
    %117 = arith.divf %115, %116 : vector<8x1xf32>
    %118 = vector.broadcast %110 : vector<8x1xf32> to vector<8x32xf32>
    %119 = arith.subf %104, %118 : vector<8x32xf32>
    %cst_58 = arith.constant 9.99999974E-6 : f32
    %120 = vector.broadcast %cst_58 : f32 to vector<8x1xf32>
    %121 = arith.addf %117, %120 : vector<8x1xf32>
    %122 = math.rsqrt %121 : vector<8x1xf32>
    %123 = vector.broadcast %122 : vector<8x1xf32> to vector<8x32xf32>
    %124 = arith.mulf %119, %123 : vector<8x32xf32>
    %125 = vector.broadcast %105 : vector<1x32xf32> to vector<8x32xf32>
    %126 = arith.mulf %124, %125 : vector<8x32xf32>
    %127 = vector.broadcast %106 : vector<1x32xf32> to vector<8x32xf32>
    %128 = arith.addf %126, %127 : vector<8x32xf32>
    %c0_59 = arith.constant 0 : index
    %c0_60 = arith.constant 0 : index
    %c0_61 = arith.constant 0 : index
    %129 = vector.load %arg16[%c0_59, %c0_60, %c0_61] : memref<1x8x32xf32, #tpu.memory_space<vmem>>, vector<1x8x32xf32>
    %130 = vector.shape_cast %129 : vector<1x8x32xf32> to vector<8x32xf32>
    %131 = vector.shape_cast %128 : vector<8x32xf32> to vector<1x8x32xf32>
    tpu.vector_store %arg16[%c0_59, %c0_60, %c0_61], %131 {strides = array<i32>} : memref<1x8x32xf32, #tpu.memory_space<vmem>>, vector<1x8x32xf32>,
    return
  }
  func.func @transform_0(%arg0: i32, %arg1: i32) -> (i32, i32, i32) {
    %c0_i32 = arith.constant 0 : i32
    %c0_i32_0 = arith.constant 0 : i32
    return %arg0, %arg1, %c0_i32 : i32, i32, i32
  }
  func.func @transform_1(%arg0: i32, %arg1: i32) -> (i32, i32, i32, i32) {
    %c0_i32 = arith.constant 0 : i32
    %c0_i32_0 = arith.constant 0 : i32
    %c0_i32_1 = arith.constant 0 : i32
    return %arg0, %c0_i32, %arg1, %c0_i32_0 : i32, i32, i32, i32
  }
  func.func @transform_2(%arg0: i32, %arg1: i32) -> (i32, i32, i32, i32) {
    %c0_i32 = arith.constant 0 : i32
    %c0_i32_0 = arith.constant 0 : i32
    %c0_i32_1 = arith.constant 0 : i32
    %c0_i32_2 = arith.constant 0 : i32
    return %arg0, %c0_i32, %c0_i32_0, %c0_i32_1 : i32, i32, i32, i32
  }
  func.func @transform_3(%arg0: i32, %arg1: i32) -> (i32, i32, i32, i32) {
    %c0_i32 = arith.constant 0 : i32
    %c0_i32_0 = arith.constant 0 : i32
    %c0_i32_1 = arith.constant 0 : i32
    %c0_i32_2 = arith.constant 0 : i32
    return %arg0, %c0_i32, %c0_i32_0, %c0_i32_1 : i32, i32, i32, i32
  }
  func.func @transform_4(%arg0: i32, %arg1: i32) -> (i32, i32, i32) {
    %c0_i32 = arith.constant 0 : i32
    %c0_i32_0 = arith.constant 0 : i32
    %c0_i32_1 = arith.constant 0 : i32
    %c0_i32_2 = arith.constant 0 : i32
    return %c0_i32, %c0_i32_0, %c0_i32_1 : i32, i32, i32
  }
  func.func @transform_5(%arg0: i32, %arg1: i32) -> (i32, i32) {
    %c0_i32 = arith.constant 0 : i32
    %c0_i32_0 = arith.constant 0 : i32
    %c0_i32_1 = arith.constant 0 : i32
    return %c0_i32, %c0_i32_0 : i32, i32
  }
  func.func @transform_6(%arg0: i32, %arg1: i32) -> (i32, i32) {
    %c0_i32 = arith.constant 0 : i32
    %c0_i32_0 = arith.constant 0 : i32
    %c0_i32_1 = arith.constant 0 : i32
    return %c0_i32, %c0_i32_0 : i32, i32
  }
  func.func @transform_7(%arg0: i32, %arg1: i32) -> (i32, i32) {
    %c0_i32 = arith.constant 0 : i32
    %c0_i32_0 = arith.constant 0 : i32
    %c0_i32_1 = arith.constant 0 : i32
    return %c0_i32, %c0_i32_0 : i32, i32
  }
  func.func @transform_8(%arg0: i32, %arg1: i32) -> (i32, i32) {
    %c0_i32 = arith.constant 0 : i32
    %c0_i32_0 = arith.constant 0 : i32
    %c0_i32_1 = arith.constant 0 : i32
    return %c0_i32, %c0_i32_0 : i32, i32
  }
  func.func @transform_9(%arg0: i32, %arg1: i32) -> (i32, i32) {
    %c0_i32 = arith.constant 0 : i32
    %c0_i32_0 = arith.constant 0 : i32
    %c0_i32_1 = arith.constant 0 : i32
    return %c0_i32, %c0_i32_0 : i32, i32
  }
  func.func @transform_10(%arg0: i32, %arg1: i32) -> (i32, i32) {
    %c0_i32 = arith.constant 0 : i32
    %c0_i32_0 = arith.constant 0 : i32
    %c0_i32_1 = arith.constant 0 : i32
    return %c0_i32, %c0_i32_0 : i32, i32
  }
  func.func @transform_11(%arg0: i32, %arg1: i32) -> (i32, i32) {
    %c0_i32 = arith.constant 0 : i32
    %c0_i32_0 = arith.constant 0 : i32
    %c0_i32_1 = arith.constant 0 : i32
    return %c0_i32, %c0_i32_0 : i32, i32
  }
  func.func @transform_12(%arg0: i32, %arg1: i32) -> (i32, i32) {
    %c0_i32 = arith.constant 0 : i32
    %c0_i32_0 = arith.constant 0 : i32
    %c0_i32_1 = arith.constant 0 : i32
    return %c0_i32, %c0_i32_0 : i32, i32
  }
  func.func @transform_13(%arg0: i32, %arg1: i32) -> (i32, i32) {
    %c0_i32 = arith.constant 0 : i32
    %c0_i32_0 = arith.constant 0 : i32
    %c0_i32_1 = arith.constant 0 : i32
    return %c0_i32, %c0_i32_0 : i32, i32
  }
  func.func @transform_14(%arg0: i32, %arg1: i32) -> (i32, i32, i32) {
    %c0_i32 = arith.constant 0 : i32
    %c0_i32_0 = arith.constant 0 : i32
    return %arg0, %arg1, %c0_i32 : i32, i32, i32
  }
}

</mosaic_0001>

<bundles_post_ra>
// kernel: encoder_forward.4
= control target key start
LH: loop header
LB: loop body
LE: loop exit
PB: predicated region body
PF: predicated region fallthrough
CT: control target
= control target key end

     0   :  { %s1017_s17 = smov 0   ;;  %s1019_s18 = smov 0   ;;  %s1104_s0 = inlined_call_operand.vmem [shape: f32[2,8,32], index: 0, kind: input, shape index: {}]   ;;  %s1105_s1 = inlined_call_operand.vmem [shape: f32[1,32], index: 1, kind: input, shape index: {}]   ;;  %s1106_s2 = inlined_call_operand.vmem [shape: f32[1,32], index: 2, kind: input, shape index: {}]   ;;  %s1107_s3 = inlined_call_operand.vmem [shape: bf16[32,32], index: 3, kind: input, shape index: {}]   ;;  %s1108_s4 = inlined_call_operand.vmem [shape: f32[1,32], index: 4, kind: input, shape index: {}]   ;;  %s1109_s5 = inlined_call_operand.vmem [shape: bf16[32,32], index: 5, kind: input, shape index: {}]   ;;  %s1110_s6 = inlined_call_operand.vmem [shape: f32[1,32], index: 6, kind: input, shape index: {}]   ;;  %s1111_s7 = inlined_call_operand.vmem [shape: bf16[32,32], index: 7, kind: input, shape index: {}]   ;;  %s1112_s8 = inlined_call_operand.vmem [shape: f32[1,32], index: 8, kind: input, shape index: {}]   ;;  %s1113_s9 = inlined_call_operand.vmem [shape: bf16[2,8,32], index: 9, kind: output, shape index: {0}]   ;;  %s1114_s10 = inlined_call_operand.vmem [shape: bf16[2,8,32], index: 10, kind: output, shape index: {1}]   ;;  %s1115_s11 = inlined_call_operand.vmem [shape: bf16[2,8,32], index: 11, kind: output, shape index: {2}]  }
   0x1   :  { %s1021_s19 = smov 0  }
   0x2 LB: > { %s34_s20 = sadd.s32 1, %s949_s18  ;;  %p843_p0 = scmp.ge.s32.totalorder %s953_s19, 1  ;;  %s953_s19 = sphi %s1021_s19, %s22_s19   ;;  %s949_s18 = sphi %s1019_s18, %s1117_s18   ;;  %s945_s17 = sphi %s1017_s17, %s1116_s17  }
   0x3   : > { %p36_p1 = scmp.ge.s32.totalorder %s34_s20, 2  ;;  %p364_p2 = scmp.lt.s32.totalorder %s953_s19, 3 }
   0x5   : > { %s1119_s20 = smov (%p36_p1, %s34_s20), 0  ;;  %p365_p3 = pnand %p843_p0, %p364_p2 }
   0x6   : > { %p422_p4 = scmp.lt.s32.totalorder (!%p365_p3), %s945_s17, 1 }
   0x7   : > { %368 = sbr.rel (%p365_p3) target bundleno = 533 (0x215), region = 56 }
   0xc   : > { %s1121_s17 = smov (!%p422_p4, %s945_s17), 1  ;;  %vm454_vm0 = vcmask 261120   ;;  %v923_v7 = vld [vmem:[%s1107_s3 + $0x8] sm:$0xff]   ;;  %v955_v9 = vmov 0.0   ;;  %v925_v10 = vld [vmem:[%s1107_s3] sm:$0xff]   ;;  %vm956_vm1 = vmmov 0  }
   0xd   : > { %s844_s21 = sshll.u32 %s1121_s17, 3  ;;  %v924_v8 = vld [vmem:[%s1109_s5 + $0x8] sm:$0xff]   ;;  %873 = vmatprep.subr.bf16.mxu0 %v955_v9  ;;  %881 = vmatprep.subr.bf16.mxu1 %v955_v9  ;;  %v926_v11 = vld [vmem:[%s1109_s5] sm:$0xff]   ;;  %s845_s30 = sshll.u32 %s1121_s17, 2  ;;  %vm677_vm2 = vcmask 257024  }
   0xe   : > { %s428_s24 = scalar_lea.vmem %s1104_s0, %s844_s21  ;;  %874 = vmatpush3.bf16.msra.mxu0 %v923_v7  ;;  %882 = vmatpush3.bf16.msra.mxu1 %v924_v8  ;;  %v848_v16 = vld [vmem:[%s1105_s1] ss:$0 sm:$0xff]  ;;  %v927_v21 = vld [vmem:[%s1111_s7 + $0x8] sm:$0xff]   ;;  %s435_s14 = scalar_lea.vmem %s1113_s9, %s845_s30 }
   0xf   : > { %v451_v0 = vld [vmem:[%s428_s24] sm:$0xff]  ;;  %875 = vmatprep.subr.bf16.mxu0 %v955_v9  ;;  %883 = vmatprep.subr.bf16.mxu1 %v955_v9  ;;  %s442_s21 = scalar_lea.vmem %s1114_s10, %s845_s30  ;;  %s449_s25 = scalar_lea.vmem %s1115_s11, %s845_s30 }
  0x10   : > { %v455_v1 = vsel %vm454_vm0, %v451_v0, 0.0  ;;  %877 = vmatprep.mubr.msk.bf16.mxu0 %vm956_vm1, %v955_v9  ;;  %885 = vmatprep.mubr.msk.bf16.mxu1 %vm956_vm1, %v955_v9  ;;  %v849_v18 = vld [vmem:[%s1106_s2] ss:$0 sm:$0xff] }
  0x11   : > { %456 = vadd.xlane.f32.xlu0 %v455_v1  ;;  %v928_v23 = vld [vmem:[%s1111_s7] sm:$0xff]  }
  0x12   : > { %876 = vmatpush3.bf16.msra.mxu0 %v925_v10  ;;  %884 = vmatpush3.bf16.msra.mxu1 %v926_v11  ;;  %v850_v24 = vld [vmem:[%s1108_s4] ss:$0 sm:$0xff] }
  0x13   : > { %889 = vmatprep.subr.bf16.mxu0 %v955_v9  ;;  %v854_v25 = vld [vmem:[%s1110_s6] ss:$0 sm:$0xff] }
  0x14   : > { %v858_v38 = vld [vmem:[%s1112_s8] ss:$0 sm:$0xff] }
  0x9a   : > { %v457_v2 = vpop.xlane.xlu0 %456 }
  0x9b   : > { %v459_v3 = vmul.f32 0.03125, %v457_v2 }
  0x9d   : > { %v460_v4 = vsub.f32 %v451_v0, %v459_v3 }
  0x9f   : > { %v461_v5 = vmul.f32 %v460_v4, %v460_v4 }
  0xa1   : > { %v462_v6 = vsel %vm454_vm0, %v461_v5, 0.0 }
  0xa2   : > { %463 = vadd.xlane.f32.xlu0 %v462_v6 }
 0x12b   : > { %v464_v12 = vpop.xlane.xlu0 %463 }
 0x12c   : > { %v465_v13 = vmul.f32 0.03125, %v464_v12 }
 0x12e   : > { %v466_v14 = vadd.f32 1e-05, %v465_v13 }
 0x130   : > { %929 = vrsqrt.f32 %v466_v14 }
 0x13d   : > { %v930_v15 = vpop.eup %929 }
 0x13e   : > { %v468_v17 = vmul.f32 %v930_v15, %v460_v4 }
 0x140   : > { %v475_v19 = vmul.f32 %v848_v16, %v468_v17 }
 0x142   : > { %v482_v20 = vadd.f32 %v849_v18, %v475_v19 }
 0x144   : > { %v483_v22 = vpack.c.bf16 %v482_v20, %v482_v20 }
 0x146   : > { %878 = vmatmul.mubr.msk.bf16.vlgmr.msra.gmra.mxu0 %vm454_vm0, %v483_v22  ;;  %886 = vmatmul.mubr.msk.bf16.vlgmr.msra.gmra.mxu1 %vm454_vm0, %v483_v22 }
 0x147   : > { %890 = vmatpush3.bf16.msra.mxu0 %v927_v21  ;;  %893 = vmatprep.mubr.msk.bf16.mxu0 %vm956_vm1, %v955_v9 }
 0x148   : > { %891 = vmatprep.subr.bf16.mxu0 %v955_v9 }
 0x14b   : > { %892 = vmatpush3.bf16.msra.mxu0 %v928_v23 }
 0x14e   : > { %894 = vmatmul.mubr.msk.bf16.vlgmr.msra.gmra.mxu0 %vm454_vm0, %v483_v22 }
 0x206   : > { %v544_v26 = vpop.f32.mrf.mxu0  ;;  %v607_v27 = vpop.f32.mrf.mxu1 }
 0x207   : > { %v545_v28 = vadd.f32 %v850_v24, %v544_v26  ;;  %v608_v29 = vadd.f32 %v854_v25, %v607_v27 }
 0x208   : > { %v879_v30 = vpop.f32.mrf.mxu0  ;;  %v887_v31 = vpop.f32.mrf.mxu1 }
 0x209   : > { %v676_v32 = vpack.c.bf16 %v545_v28, %v545_v28  ;;  %v679_v33 = vpack.c.bf16 %v608_v29, %v608_v29 }
 0x20a   : > { %v547_v34 = vpop.f32.mrf.mxu0  ;;  %v610_v35 = vpop.f32.mrf.mxu1 }
 0x20b   : > { %678 = vst.msk [vmem:[%s435_s14] sm:$0xf] %vm677_vm2, %v676_v32  ;;  %680 = vst.msk [vmem:[%s442_s21] sm:$0xf] %vm677_vm2, %v679_v33 }
 0x20c   : > { %v880_v36 = vpop.f32.mrf.mxu0  ;;  %v888_v37 = vpop.f32.mrf.mxu1 }
 0x20e   : > { %v670_v39 = vpop.f32.mrf.mxu0 }
 0x20f   : > { %v671_v40 = vadd.f32 %v858_v38, %v670_v39 }
 0x210   : > { %v895_v41 = vpop.f32.mrf.mxu0 }
 0x211   : > { %v681_v42 = vpack.c.bf16 %v671_v40, %v671_v40 }
 0x212   : > { %v673_v43 = vpop.f32.mrf.mxu0 }
 0x213   : > { %682 = vst.msk [vmem:[%s449_s25] sm:$0xf] %vm677_vm2, %v681_v42 }
 0x214   : > { %v896_v44 = vpop.f32.mrf.mxu0 }
 0x215 PF: > { %s22_s19 = sadd.s32 1, %s953_s19   ;;  %s1116_s17 = smov %s949_s18 }
 0x216   : > { %p19_p5 = scmp.ge.s32.totalorder %s22_s19, 4   ;;  %s1117_s18 = smov %s1119_s20 }
 0x218   :  { %21 = sbr.rel (!%p19_p5) target bundleno = 2 (0x2), region = 110 }

// kernel: encoder_forward.7
= control target key start
LH: loop header
LB: loop body
LE: loop exit
PB: predicated region body
PF: predicated region fallthrough
CT: control target
= control target key end

     0   :  { %s2276_s0 = inlined_call_operand.vmem [shape: f32[2,8,32], index: 0, kind: input, shape index: {}]   ;;  %s2277_s1 = inlined_call_operand.vmem [shape: bf16[2,4,8,8], index: 1, kind: input, shape index: {}]   ;;  %s2278_s2 = inlined_call_operand.vmem [shape: bf16[2,4,8,8], index: 2, kind: input, shape index: {}]   ;;  %s2279_s3 = inlined_call_operand.vmem [shape: bf16[2,4,8,8], index: 3, kind: input, shape index: {}]   ;;  %s2280_s4 = inlined_call_operand.vmem [shape: bf16[4,8,32], index: 4, kind: input, shape index: {}]   ;;  %s2281_s5 = inlined_call_operand.vmem [shape: f32[1,32], index: 5, kind: input, shape index: {}]   ;;  %s2282_s6 = inlined_call_operand.vmem [shape: f32[1,32], index: 6, kind: input, shape index: {}]   ;;  %s2283_s7 = inlined_call_operand.vmem [shape: f32[1,32], index: 7, kind: input, shape index: {}]   ;;  %s2284_s8 = inlined_call_operand.vmem [shape: bf16[32,128], index: 8, kind: input, shape index: {}]   ;;  %s2285_s9 = inlined_call_operand.vmem [shape: f32[1,128], index: 9, kind: input, shape index: {}]   ;;  %s2286_s10 = inlined_call_operand.vmem [shape: bf16[128,32], index: 10, kind: input, shape index: {}]   ;;  %s2287_s11 = inlined_call_operand.vmem [shape: f32[1,32], index: 11, kind: input, shape index: {}]   ;;  %s2288_s12 = inlined_call_operand.vmem [shape: f32[1,32], index: 12, kind: input, shape index: {}]   ;;  %s2289_s13 = inlined_call_operand.vmem [shape: f32[1,32], index: 13, kind: input, shape index: {}]   ;;  %s2290_s14 = inlined_call_operand.hbm [shape: f32[2,8,32], index: 14, kind: output, shape index: {}]  }
   0x1   :  { %2293 = sst [smem:[#allocation7_spill]] %s2276_s0 }
   0x2   :  { %2294 = sst [smem:[#allocation8_spill]] %s2277_s1 }
   0x3   :  { %2295 = sst [smem:[#allocation9_spill]] %s2278_s2 }
   0x4   :  { %2296 = sst [smem:[#allocation10_spill]] %s2279_s3 }
   0x5   :  { %2297 = sst [smem:[#allocation11_spill]] %s2280_s4 }
   0x6   :  { %19 = vsyncpa [#allocation3], 0 }
   0x7   :  { %21 = vsyncpa [#allocation3 + $0x1], 0  ;;  %s2003_s29 = smov 0   ;;  %s2005_s30 = smov 0  }
   0x8   :  { %s2007_s15 = smov 0   ;;  %s2009_s16 = smov 0  }
   0x9   :  { %s2011_s17 = smov 0   ;;  %s2013_s18 = smov 0  }
   0xa LB: > { %2298 = sst [smem:[#allocation5_spill]] %s1919_s17  ;;  %s1572_s19 = sadd.s32 4294967295, %s1923_s18   ;;  %s1923_s18 = sphi %s2013_s18, %s27_s18   ;;  %s1919_s17 = sphi %s2011_s17, %s2308_s17   ;;  %s1915_s16 = sphi %s2009_s16, %s2307_s16   ;;  %s1911_s15 = sphi %s2007_s15, %s2311_s15   ;;  %s1907_s30 = sphi %s2005_s30, %s2310_s30   ;;  %s1903_s29 = sphi %s2003_s29, %s2309_s29  }
   0xb   : > { %s1573_s20 = sadd.s32 4294967294, %s1923_s18   ;;  %s39_s21 = sadd.s32 1, %s1919_s17 }
   0xc   : > { %s366_s22 = sadd.s32 1, %s1911_s15  ;;  %p41_p0 = scmp.ge.s32.totalorder %s39_s21, 2 }
   0xd   : > { %p376_p1 = scmp.ne.s32.totalorder %s1911_s15, %s1907_s30  ;;  %p377_p2 = scmp.eq.s32.totalorder %s1572_s19, 1 }
   0xe   : > { %p382_p3 = scmp.ne.s32.totalorder %s1907_s30, %s1903_s29  ;;  %s2313_s21 = smov (%p41_p0, %s39_s21), 0 }
   0xf   : > { %2299 = sst [smem:[#allocation6_spill]] %s2313_s21  ;;  %p2043_p4 = por %p377_p2, %p376_p1 }
  0x10   : > { %p383_p5 = scmp.eq.s32.totalorder %s1573_s20, 1  ;;  %s361_s24 = ssub.s32 %s1919_s17, %s2313_s21 }
  0x11   : > { %p1576_p6 = scmp.ge.s32.totalorder %s1923_s18, 1  ;;  %p364_p7 = scmp.eq.s32.totalorder %s361_s24, 0 }
  0x12   : > { %p2050_p8 = por %p383_p5, %p382_p3  ;;  %p468_p9 = scmp.lt.s32.totalorder %s1923_s18, 3 }
  0x13   : > { %s2056_s26 = scalar_select %p364_p7, %s1911_s15, %s366_s22  }
  0x14   : > { %p469_p10 = pnand %p1576_p6, %p468_p9 }
  0x15   : > { %p534_p11 = scmp.lt.s32.totalorder (!%p469_p10), %s1915_s16, 1  ;;  %s2302_s2 = sld [smem:[#allocation9_spill]] (!%p469_p10) }
  0x16   : > { %472 = sbr.rel (%p469_p10) target bundleno = 2016 (0x7e0), region = 76  ;;  %s2303_s1 = sld [smem:[#allocation8_spill]] (!%p469_p10) }
  0x17   : > { %s2304_s3 = sld [smem:[#allocation10_spill]] (!%p469_p10)  ;;  %s531_s24 = sand.u32 (!%p469_p10), 1, %s1907_s30  }
  0x18   : > { %s2305_s4 = sld [smem:[#allocation11_spill]] (!%p469_p10) }
  0x19   : > { %s2306_s0 = sld [smem:[#allocation7_spill]] (!%p469_p10) }
  0x1b   : > { %v1925_v0 = vmov 0.0   ;;  %vm1926_vm0 = vmmov 0   ;;  %s2063_s27 = scalar_select %p534_p11, %s1915_s16, 1  ;;  %vm573_vm1 = vcmask 64512   ;;  %vm809_vm2 = vcmask 1043456  }
  0x1c   : > { %1658 = vmatprep.subr.bf16.mxu0 %v1925_v0  ;;  %1660 = vmatprep.mubr.msk.bf16.mxu0 %vm1926_vm0, %v1925_v0  ;;  %vm1196_vm3 = vcmask 261120  }
  0x1d   : > { %1676 = vmatprep.subr.bf16.mxu1 %v1925_v0  ;;  %1678 = vmatprep.mubr.msk.bf16.mxu1 %vm1926_vm0, %v1925_v0  ;;  %s2069_s28 = sshll.u32 %s2063_s27, 4  ;;  %s1578_s20 = sshll.u32 %s2063_s27, 3 }
  0x1e   : > { %s553_s22 = scalar_lea.vmem %s2302_s2, %s2069_s28  ;;  %s548_s17 = scalar_lea.vmem %s2303_s1, %s2069_s28 }
  0x1f   : > { %v565_v1 = vld [vmem:[%s553_s22] sm:$0xf]  ;;  %v568_v3 = vld [vmem:[%s553_s22 + $0xc] sm:$0xf]  ;;  %v566_v5 = vld [vmem:[%s553_s22 + $0x4] sm:$0xf]  ;;  %s558_s19 = scalar_lea.vmem %s2304_s3, %s2069_s28 }
  0x20   : > { %v578_v2 = vsel %vm573_vm1, %v565_v1, 0  ;;  %v716_v4 = vsel %vm573_vm1, %v568_v3, 0  ;;  %v561_v6 = vld [vmem:[%s548_s17] sm:$0xf]  ;;  %v624_v7 = vsel %vm573_vm1, %v566_v5, 0 }
  0x21   : > { %1659 = vmatpush3.bf16.xpose.msra.mxu0 %v578_v2  ;;  %1677 = vmatpush3.bf16.xpose.msra.mxu1 %v716_v4  ;;  %v564_v8 = vld [vmem:[%s548_s17 + $0xc] sm:$0xf]  ;;  %v567_v9 = vld [vmem:[%s553_s22 + $0x8] sm:$0xf]  ;;  %v562_v10 = vld [vmem:[%s548_s17 + $0x4] sm:$0xf] }
  0x22   : > { %1664 = vmatprep.subr.bf16.mxu0 %v1925_v0  ;;  %1688 = vmatprep.subr.bf16.mxu1 %v1925_v0  ;;  %v670_v11 = vsel %vm573_vm1, %v567_v9, 0  ;;  %v563_v12 = vld [vmem:[%s548_s17 + $0x8] sm:$0xf]  ;;  %v569_v53 = vld [vmem:[%s558_s19] sm:$0xf]  ;;  %s540_s17 = scalar_lea.vmem %s2306_s0, %s1578_s20  ;;  %s1616_s20 = sshll.u32 %s1915_s16, 7 }
  0x23   : > { %v811_v54 = vsel %vm809_vm2, %v569_v53, 0  ;;  %v570_v55 = vld [vmem:[%s558_s19 + $0x4] sm:$0xf]  ;;  %v571_v60 = vld [vmem:[%s558_s19 + $0x8] sm:$0xf]  ;;  %s1457_s3 = scalar_lea.hbm %s2290_s14, %s1616_s20 }
  0x24   : > { %v857_v56 = vsel %vm809_vm2, %v570_v55, 0  ;;  %v903_v1 = vsel %vm809_vm2, %v571_v60, 0  ;;  %v572_v4 = vld [vmem:[%s558_s19 + $0xc] sm:$0xf]  ;;  %v560_v55 = vld [vmem:[%s540_s17] sm:$0xff]  ;;  %s1577_s17 = sshll.u32 %s531_s24, 3 }
  0x25   : > { %s533_s22 = scalar_lea.vmem [#allocation2], %s1577_s17  ;;  %s1927_s19 = smov [#allocation2]  }
  0x26   : > { %s1459_s0 = sshll.u32 %s533_s22, 4  ;;  %s1851_s27 = sshll.u32 %s1927_s19, 4  ;;  %s1460_s0 = int_to_ptr.vmem [resolvable:$true] %s1459_s0  ;;  %s1852_s27 = int_to_ptr.vmem [resolvable:$false] %s1851_s27 }
  0x27   : > { %s1847_s21 = scalar_lea.vmem %s1460_s0, 128  ;;  %s1853_s16 = scalar_lea.vmem %s1852_s27, 256 }
  0x28   : > { %1661 = vmatmul.mubr.msk.bf16.vlgmr.msra.gmra.mxu0 %vm573_vm1, %v561_v6  ;;  %1679 = vmatmul.mubr.msk.bf16.vlgmr.msra.gmra.mxu1 %vm573_vm1, %v564_v8  ;;  %p1848_p12 = scmp.ne.s32.totalorder %s1460_s0, %s1847_s21  ;;  %p1854_p1 = scmp.lt.s32.totalorder %s1460_s0, %s1852_s27 }
  0x29   : > { %1665 = vmatpush3.bf16.xpose.msra.mxu0 %v624_v7  ;;  %1666 = vmatprep.mubr.msk.bf16.mxu0 %vm1926_vm0, %v1925_v0  ;;  %v949_v7 = vsel %vm809_vm2, %v572_v4, 0  ;;  %p1855_p2 = scmp.lt.s32.totalorder %s1853_s16, %s1847_s21 }
  0x2a   : > { %1670 = vmatprep.subr.bf16.mxu0 %v1925_v0  ;;  %1690 = vmatprep.mubr.msk.bf16.mxu1 %vm1926_vm0, %v1925_v0  ;;  %p1849_p13 = pnand %p1848_p12, %p2043_p4 }
  0x2b   : > { %1689 = vmatpush3.bf16.msra.mxu1 %v857_v56  ;;  %p1856_p3 = por %p1855_p2, %p1854_p1 }
  0x2c   : > { %1700 = vmatprep.subr.bf16.mxu1 %v1925_v0  ;;  %p1850_p0 = pneg %p1849_p13 }
  0x2e   : > { %p1857_p5 = pnand %p1856_p3, %p1850_p0 }
  0x30   : > { %1667 = vmatmul.mubr.msk.bf16.vlgmr.msra.gmra.mxu0 %vm573_vm1, %v562_v10 }
  0x31   : > { %1671 = vmatpush3.bf16.xpose.msra.mxu0 %v670_v11  ;;  %1672 = vmatprep.mubr.msk.bf16.mxu0 %vm1926_vm0, %v1925_v0 }
  0x32   : > { %1682 = vmatprep.subr.bf16.mxu0 %v1925_v0 }
  0x38   : > { %1673 = vmatmul.mubr.msk.bf16.vlgmr.msra.gmra.mxu0 %vm573_vm1, %v563_v12 }
  0x39   : > { %1684 = vmatprep.mubr.msk.bf16.mxu0 %vm1926_vm0, %v1925_v0  ;;  %1683 = vmatpush3.bf16.msra.mxu0 %v811_v54 }
  0x3a   : > { %1694 = vmatprep.subr.bf16.mxu0 %v1925_v0 }
  0xe8   : > { %v614_v13 = vpop.f32.mrf.mxu0  ;;  %v752_v16 = vpop.f32.mrf.mxu1 }
  0xe9   : > { %v758_v14 = vsel %vm573_vm1, %v614_v13, -inf  ;;  %v767_v30 = vsel %vm573_vm1, %v752_v16, -inf }
  0xea   : > { %759 = vmax.xlane.f32.xlu0 %v758_v14  ;;  %v1662_v15 = vpop.f32.mrf.mxu0  ;;  %v1680_v18 = vpop.f32.mrf.mxu1  ;;  %v991_v14 = vld [vmem:[%s2305_s4] sm:$0xf] }
  0xeb   : > { %v1047_v15 = vsel %vm809_vm2, %v991_v14, 0  ;;  %v994_v18 = vld [vmem:[%s2305_s4 + $0xc] sm:$0xf]  ;;  %v1598_v14 = vld [vmem:[%s2282_s6] ss:$0 sm:$0xff] }
  0xec   : > { %v617_v17 = vpop.f32.mrf.mxu0  ;;  %v755_v20 = vpop.f32.mrf.mxu1 }
  0xee   : > { %v1663_v19 = vpop.f32.mrf.mxu0  ;;  %v1681_v22 = vpop.f32.mrf.mxu1 }
  0xf0   : > { %v660_v21 = vpop.f32.mrf.mxu0 }
  0xf1   : > { %v761_v23 = vsel %vm573_vm1, %v660_v21, -inf }
  0xf2   : > { %762 = vmax.xlane.f32.xlu0 %v761_v23  ;;  %v1668_v24 = vpop.f32.mrf.mxu0 }
  0xf4   : > { %v663_v25 = vpop.f32.mrf.mxu0 }
  0xf5   : > { %v993_v25 = vld [vmem:[%s2305_s4 + $0x8] sm:$0xf] }
  0xf6   : > { %v1669_v26 = vpop.f32.mrf.mxu0 }
  0xf8   : > { %v706_v27 = vpop.f32.mrf.mxu0 }
  0xf9   : > { %v764_v28 = vsel %vm573_vm1, %v706_v27, -inf }
  0xfa   : > { %765 = vmax.xlane.f32.xlu1 %v764_v28  ;;  %v1674_v29 = vpop.f32.mrf.mxu0  ;;  %v1094_v28 = vsel %vm809_vm2, %v993_v25, 0  ;;  %v1822_v25 = vld [vmem:[%s2286_s10 + $0x10] sm:$0xff]  }
  0xfc   : > { %v709_v31 = vpop.f32.mrf.mxu0 }
  0xfe   : > { %768 = vmax.xlane.f32.xlu1 %v767_v30  ;;  %v1675_v32 = vpop.f32.mrf.mxu0 }
 0x173   : > { %v760_v33 = vpop.xlane.xlu0 %759 }
 0x174   : > { %v770_v34 = vsub.f32 %v614_v13, %v760_v33 }
 0x176   : > { %v774_v35 = vmul.f32 1.442695, %v770_v34 }
 0x178   : > { %1825 = vpow2.f32 %v774_v35 }
 0x17b   : > { %v763_v36 = vpop.xlane.xlu0 %762 }
 0x17c   : > { %v771_v37 = vsub.f32 %v660_v21, %v763_v36  ;;  %v1142_v21 = vsel %vm809_vm2, %v994_v18, 0 }
 0x17e   : > { %v776_v38 = vmul.f32 1.442695, %v771_v37 }
 0x180   : > { %1827 = vpow2.f32 %v776_v38 }
 0x183   : > { %v766_v39 = vpop.xlane.xlu1 %765 }
 0x184   : > { %v772_v40 = vsub.f32 %v706_v27, %v766_v39 }
 0x185   : > { %v1826_v41 = vpop.eup %1825 }
 0x186   : > { %v778_v42 = vmul.f32 1.442695, %v772_v40  ;;  %v782_v43 = vsel %vm573_vm1, %v1826_v41, 0.0 }
 0x187   : > { %783 = vadd.xlane.f32.xlu0 %v782_v43  ;;  %v769_v44 = vpop.xlane.xlu1 %768 }
 0x188   : > { %1829 = vpow2.f32 %v778_v42  ;;  %v773_v45 = vsub.f32 %v752_v16, %v769_v44  ;;  %v992_v16 = vld [vmem:[%s2305_s4 + $0x4] sm:$0xf]  ;;  %s1445_s4 = scalar_lea.sflag [#allocation3], %s531_s24 }
 0x189   : > { %v1001_v17 = vsel %vm809_vm2, %v992_v16, 0  ;;  %v1599_v16 = vld [vmem:[%s2283_s7] ss:$0 sm:$0xff] }
 0x18a   : > { %v780_v46 = vmul.f32 1.442695, %v773_v45 }
 0x18c   : > { %1831 = vpow2.f32 %v780_v46 }
 0x18d   : > { %v1828_v47 = vpop.eup %1827 }
 0x18e   : > { %v785_v48 = vsel %vm573_vm1, %v1828_v47, 0.0 }
 0x18f   : > { %786 = vadd.xlane.f32.xlu1 %v785_v48 }
 0x195   : > { %v1830_v49 = vpop.eup %1829 }
 0x196   : > { %v788_v50 = vsel %vm573_vm1, %v1830_v49, 0.0 }
 0x197   : > { %789 = vadd.xlane.f32.xlu0 %v788_v50 }
 0x199   : > { %v1832_v51 = vpop.eup %1831 }
 0x19a   : > { %v791_v52 = vsel %vm573_vm1, %v1832_v51, 0.0 }
 0x19b   : > { %792 = vadd.xlane.f32.xlu1 %v791_v52 }
 0x210   : > { %v784_v57 = vpop.xlane.xlu0 %783 }
 0x211   : > { %1833 = vrcp.f32 %v784_v57 }
 0x218   : > { %v787_v58 = vpop.xlane.xlu1 %786 }
 0x219   : > { %1835 = vrcp.f32 %v787_v58  ;;  %v1597_v58 = vld [vmem:[%s2281_s5] ss:$0 sm:$0xff] }
 0x21e   : > { %v1834_v59 = vpop.eup %1833 }
 0x21f   : > { %v798_v61 = vmul.f32 %v1834_v59, %v1826_v41 }
 0x220   : > { %v790_v62 = vpop.xlane.xlu0 %789 }
 0x221   : > { %1837 = vrcp.f32 %v790_v62  ;;  %v802_v63 = vpack.c.bf16 %v798_v61, %v798_v61 }
 0x223   : > { %1685 = vmatmul.mubr.msk.bf16.vlgmr.msra.gmra.mxu0 %vm573_vm1, %v802_v63 }
 0x224   : > { %v793_v2 = vpop.xlane.xlu1 %792  ;;  %1695 = vmatpush3.bf16.msra.mxu0 %v903_v1  ;;  %1696 = vmatprep.mubr.msk.bf16.mxu0 %vm1926_vm0, %v1925_v0 }
 0x225   : > { %1839 = vrcp.f32 %v793_v2  ;;  %1706 = vmatprep.subr.bf16.mxu0 %v1925_v0 }
 0x226   : > { %v1836_v3 = vpop.eup %1835 }
 0x227   : > { %v799_v5 = vmul.f32 %v1836_v3, %v1828_v47 }
 0x229   : > { %v803_v6 = vpack.c.bf16 %v799_v5, %v799_v5 }
 0x22b   : > { %1691 = vmatmul.mubr.msk.bf16.vlgmr.msra.gmra.mxu1 %vm573_vm1, %v803_v6 }
 0x22c   : > { %1701 = vmatpush3.bf16.msra.mxu1 %v949_v7  ;;  %1702 = vmatprep.mubr.msk.bf16.mxu1 %vm1926_vm0, %v1925_v0 }
 0x22d   : > { %1712 = vmatprep.subr.bf16.mxu1 %v1925_v0 }
 0x22e   : > { %v1838_v8 = vpop.eup %1837 }
 0x22f   : > { %v800_v9 = vmul.f32 %v1838_v8, %v1830_v49  ;;  %v1815_v8 = vld [vmem:[%s2284_s8 + $0x8] sm:$0xff]  }
 0x231   : > { %v804_v10 = vpack.c.bf16 %v800_v9, %v800_v9  ;;  %v1816_v9 = vld [vmem:[%s2284_s8] sm:$0xff]  }
 0x232   : > { %v1840_v11 = vpop.eup %1839 }
 0x233   : > { %1697 = vmatmul.mubr.msk.bf16.vlgmr.msra.gmra.mxu0 %vm573_vm1, %v804_v10  ;;  %v801_v12 = vmul.f32 %v1840_v11, %v1832_v51 }
 0x234   : > { %1708 = vmatprep.mubr.msk.bf16.mxu0 %vm1926_vm0, %v1925_v0  ;;  %1707 = vmatpush3.bf16.msra.mxu0 %v1001_v17 }
 0x235   : > { %v805_v13 = vpack.c.bf16 %v801_v12, %v801_v12  ;;  %1718 = vmatprep.subr.bf16.mxu0 %v1925_v0 }
 0x237   : > { %1703 = vmatmul.mubr.msk.bf16.vlgmr.msra.gmra.mxu1 %vm573_vm1, %v805_v13 }
 0x238   : > { %1714 = vmatprep.mubr.msk.bf16.mxu1 %vm1926_vm0, %v1925_v0  ;;  %1713 = vmatpush3.bf16.msra.mxu1 %v1047_v15 }
 0x239   : > { %1724 = vmatprep.subr.bf16.mxu1 %v1925_v0 }
 0x2e3   : > { %v847_v19 = vpop.f32.mrf.mxu0 }
 0x2e4   : > { %v995_v20 = vpack.c.bf16 %v847_v19, %v847_v19 }
 0x2e5   : > { %v1686_v22 = vpop.f32.mrf.mxu0 }
 0x2e6   : > { %1715 = vmatmul.mubr.msk.bf16.vlgmr.msra.gmra.mxu1 %vm573_vm1, %v995_v20  ;;  %v1817_v20 = vld [vmem:[%s2286_s10 + $0x38] sm:$0xff]   ;;  %v1819_v22 = vld [vmem:[%s2286_s10 + $0x28] sm:$0xff]  }
 0x2e7   : > { %v850_v23 = vpop.f32.mrf.mxu0  ;;  %1725 = vmatpush3.bf16.msra.mxu1 %v1142_v21  ;;  %1726 = vmatprep.mubr.msk.bf16.mxu1 %vm1926_vm0, %v1925_v0  ;;  %v1818_v21 = vld [vmem:[%s2286_s10 + $0x30] sm:$0xff]  }
 0x2e8   : > { %1738 = vmatprep.subr.bf16.mxu1 %v1925_v0  ;;  %v1820_v23 = vld [vmem:[%s2286_s10 + $0x20] sm:$0xff]  }
 0x2e9   : > { %v1687_v24 = vpop.f32.mrf.mxu0 }
 0x2ea   : > { %v1821_v24 = vld [vmem:[%s2286_s10 + $0x18] sm:$0xff]  }
 0x2eb   : > { %v893_v26 = vpop.f32.mrf.mxu1 }
 0x2ec   : > { %v996_v27 = vpack.c.bf16 %v893_v26, %v893_v26  ;;  %v1823_v26 = vld [vmem:[%s2286_s10 + $0x8] sm:$0xff]  }
 0x2ed   : > { %v1692_v29 = vpop.f32.mrf.mxu1 }
 0x2ee   : > { %1709 = vmatmul.mubr.msk.bf16.vlgmr.msra.gmra.mxu0 %vm573_vm1, %v996_v27  ;;  %v1824_v27 = vld [vmem:[%s2286_s10] sm:$0xff]  }
 0x2ef   : > { %v896_v30 = vpop.f32.mrf.mxu1  ;;  %1719 = vmatpush3.bf16.msra.mxu0 %v1094_v28  ;;  %1720 = vmatprep.mubr.msk.bf16.mxu0 %vm1926_vm0, %v1925_v0  ;;  %v1600_v28 = vld [vmem:[%s2285_s9] ss:$0 sm:$0xff] }
 0x2f0   : > { %1730 = vmatprep.subr.bf16.mxu0 %v1925_v0 }
 0x2f1   : > { %v1693_v31 = vpop.f32.mrf.mxu1 }
 0x2f3   : > { %v939_v32 = vpop.f32.mrf.mxu0 }
 0x2f4   : > { %v1089_v33 = vpack.c.bf16 %v939_v32, %v939_v32 }
 0x2f5   : > { %v1698_v34 = vpop.f32.mrf.mxu0 }
 0x2f6   : > { %1721 = vmatmul.mubr.msk.bf16.vlgmr.msra.gmra.mxu0 %vm573_vm1, %v1089_v33 }
 0x2f7   : > { %v942_v35 = vpop.f32.mrf.mxu0  ;;  %v985_v36 = vpop.f32.mrf.mxu1  ;;  %1734 = vmatprep.mubr.msk.bf16.mxu0 %vm1926_vm0, %v1925_v0  ;;  %1731 = vmatpush3.bf16.msra.mxu0 %v1815_v8 }
 0x2f8   : > { %v1137_v37 = vpack.c.bf16 %v985_v36, %v985_v36  ;;  %1732 = vmatprep.subr.bf16.mxu0 %v1925_v0 }
 0x2f9   : > { %v1699_v38 = vpop.f32.mrf.mxu0  ;;  %v1704_v39 = vpop.f32.mrf.mxu1 }
 0x2fa   : > { %1727 = vmatmul.mubr.msk.bf16.vlgmr.msra.gmra.mxu1 %vm573_vm1, %v1137_v37 }
 0x2fb   : > { %v988_v40 = vpop.f32.mrf.mxu1  ;;  %1754 = vmatprep.mubr.msk.bf16.mxu1 %vm1926_vm0, %v1925_v0  ;;  %1733 = vmatpush3.bf16.msra.mxu0 %v1816_v9 }
 0x2fc   : > { %1739 = vmatpush3.bf16.msra.mxu1 %v1817_v20 }
 0x2fd   : > { %v1705_v41 = vpop.f32.mrf.mxu1  ;;  %1740 = vmatprep.subr.bf16.mxu1 %v1925_v0 }
 0x300   : > { %1741 = vmatpush3.bf16.msra.mxu1 %v1818_v21 }
 0x301   : > { %1742 = vmatprep.subr.bf16.mxu1 %v1925_v0 }
 0x304   : > { %1743 = vmatpush3.bf16.msra.mxu1 %v1819_v22 }
 0x305   : > { %1744 = vmatprep.subr.bf16.mxu1 %v1925_v0 }
 0x308   : > { %1745 = vmatpush3.bf16.msra.mxu1 %v1820_v23 }
 0x309   : > { %1746 = vmatprep.subr.bf16.mxu1 %v1925_v0 }
 0x30c   : > { %1747 = vmatpush3.bf16.msra.mxu1 %v1821_v24 }
 0x30d   : > { %1748 = vmatprep.subr.bf16.mxu1 %v1925_v0 }
 0x310   : > { %1749 = vmatpush3.bf16.msra.mxu1 %v1822_v25 }
 0x311   : > { %1750 = vmatprep.subr.bf16.mxu1 %v1925_v0 }
 0x314   : > { %1751 = vmatpush3.bf16.msra.mxu1 %v1823_v26 }
 0x315   : > { %1752 = vmatprep.subr.bf16.mxu1 %v1925_v0 }
 0x318   : > { %1753 = vmatpush3.bf16.msra.mxu1 %v1824_v27 }
 0x3a6   : > { %v1083_v42 = vpop.f32.mrf.mxu1 }
 0x3a8   : > { %v1716_v43 = vpop.f32.mrf.mxu1 }
 0x3a9   : > { %v1604_v43 = vld [vmem:[%s2287_s11] ss:$0 sm:$0xff] }
 0x3aa   : > { %v1086_v44 = vpop.f32.mrf.mxu1 }
 0x3ac   : > { %v1717_v45 = vpop.f32.mrf.mxu1 }
 0x3ae   : > { %v1037_v46 = vpop.f32.mrf.mxu0 }
 0x3af   : > { %v1084_v51 = vadd.f32 %v1083_v42, %v1037_v46 }
 0x3b0   : > { %v1710_v47 = vpop.f32.mrf.mxu0 }
 0x3b2   : > { %v1040_v48 = vpop.f32.mrf.mxu0 }
 0x3b4   : > { %v1711_v49 = vpop.f32.mrf.mxu0 }
 0x3b6   : > { %v1130_v50 = vpop.f32.mrf.mxu0 }
 0x3b7   : > { %v1136_v53 = vadd.f32 %v1130_v50, %v1084_v51 }
 0x3b8   : > { %v1722_v52 = vpop.f32.mrf.mxu0 }
 0x3ba   : > { %v1133_v54 = vpop.f32.mrf.mxu0  ;;  %v1178_v56 = vpop.f32.mrf.mxu1 }
 0x3bb   : > { %v1184_v57 = vadd.f32 %v1178_v56, %v1136_v53 }
 0x3bc   : > { %v1723_v59 = vpop.f32.mrf.mxu0  ;;  %v1728_v60 = vpop.f32.mrf.mxu1 }
 0x3bd   : > { %v1185_v61 = vadd.f32 %v1184_v57, %v560_v55  ;;  %v1613_v60 = vld [vmem:[%s2288_s12] ss:$0 sm:$0xff] }
 0x3be   : > { %v1181_v62 = vpop.f32.mrf.mxu1 }
 0x3bf   : > { %v2170_v63 = vadd.f32 %v1597_v58, %v1185_v61  ;;  %v1614_v62 = vld [vmem:[%s2289_s13] ss:$0 sm:$0xff] }
 0x3c0   : > { %v1729_v1 = vpop.f32.mrf.mxu1 }
 0x3c1   : > { %v1197_v2 = vsel %vm1196_vm3, %v2170_v63, 0.0 }
 0x3c2   : > { %1198 = vadd.xlane.f32.xlu0 %v1197_v2 }
 0x44b   : > { %v1199_v3 = vpop.xlane.xlu0 %1198 }
 0x44c   : > { %v1201_v4 = vmul.f32 0.03125, %v1199_v3 }
 0x44e   : > { %v1202_v5 = vsub.f32 %v2170_v63, %v1201_v4 }
 0x450   : > { %v1203_v6 = vmul.f32 %v1202_v5, %v1202_v5 }
 0x452   : > { %v1204_v7 = vsel %vm1196_vm3, %v1203_v6, 0.0 }
 0x453   : > { %1205 = vadd.xlane.f32.xlu1 %v1204_v7 }
 0x4dc   : > { %v1206_v10 = vpop.xlane.xlu1 %1205 }
 0x4dd   : > { %v1207_v11 = vmul.f32 0.03125, %v1206_v10 }
 0x4df   : > { %v1208_v12 = vadd.f32 1e-05, %v1207_v11 }
 0x4e1   : > { %1841 = vrsqrt.f32 %v1208_v12 }
 0x4ee   : > { %v1842_v13 = vpop.eup %1841 }
 0x4ef   : > { %v1210_v15 = vmul.f32 %v1842_v13, %v1202_v5 }
 0x4f1   : > { %v1217_v17 = vmul.f32 %v1598_v14, %v1210_v15 }
 0x4f3   : > { %v1224_v18 = vadd.f32 %v1599_v16, %v1217_v17 }
 0x4f5   : > { %v1225_v19 = vpack.c.bf16 %v1224_v18, %v1224_v18 }
 0x4f7   : > { %1735 = vmatmul.mubr.msk.bf16.vlgmr.msra.gmra.mxu0 %vm1196_vm3, %v1225_v19 }
 0x5b7   : > { %v1286_v29 = vpop.f32.mrf.mxu0 }
 0x5b8   : > { %v1287_v30 = vadd.f32 %v1600_v28, %v1286_v29 }
 0x5b9   : > { %v1736_v31 = vpop.f32.mrf.mxu0 }
 0x5ba   : > { %v1292_v32 = vmul.f32 %v1287_v30, %v1287_v30 }
 0x5bb   : > { %v1289_v33 = vpop.f32.mrf.mxu0 }
 0x5bc   : > { %v1293_v34 = vmul.f32 %v1292_v32, %v1287_v30 }
 0x5bd   : > { %v1737_v35 = vpop.f32.mrf.mxu0 }
 0x5be   : > { %v1294_v36 = vmul.f32 0.044715, %v1293_v34 }
 0x5c0   : > { %v1295_v37 = vadd.f32 %v1294_v36, %v1287_v30 }
 0x5c2   : > { %v1296_v38 = vmul.f32 0.7978846, %v1295_v37 }
 0x5c4   : > { %1843 = vtanh.f32 %v1296_v38 }
 0x5d1   : > { %v1844_v39 = vpop.eup %1843 }
 0x5d2   : > { %v1298_v40 = vadd.f32 1.0, %v1844_v39 }
 0x5d4   : > { %v1299_v41 = vmul.f32 0.5, %v1298_v40 }
 0x5d6   : > { %v1300_v0 = vmul.f32 %v1299_v41, %v1287_v30 }
 0x5d8   : > { %v1301_v42 = vpack.c.bf16 %v1300_v0, %v1300_v0 }
 0x5da   : > { %1755 = vmatmul.mubr.bf16.vlgmr.msra.gmra.mxu1 %v1301_v42 }
 0x69a   : > { %v1407_v44 = vpop.f32.mrf.mxu1 }
 0x69b   : > { %v1408_v45 = vadd.f32 %v1604_v43, %v1407_v44 }
 0x69c   : > { %v1756_v46 = vpop.f32.mrf.mxu1 }
 0x69d   : > { %v1413_v47 = vadd.f32 %v1408_v45, %v2170_v63 }
 0x69e   : > { %v1410_v48 = vpop.f32.mrf.mxu1 }
 0x69f   : > { %v1416_v49 = vsel %vm1196_vm3, %v1413_v47, 0.0 }
 0x6a0   : > { %1417 = vadd.xlane.f32.xlu0 %v1416_v49  ;;  %v1757_v50 = vpop.f32.mrf.mxu1 }
 0x729   : > { %v1418_v51 = vpop.xlane.xlu0 %1417 }
 0x72a   : > { %v1419_v52 = vmul.f32 0.03125, %v1418_v51 }
 0x72c   : > { %v1420_v53 = vsub.f32 %v1413_v47, %v1419_v52 }
 0x72e   : > { %v1421_v54 = vmul.f32 %v1420_v53, %v1420_v53 }
 0x730   : > { %v1422_v55 = vsel %vm1196_vm3, %v1421_v54, 0.0 }
 0x731   : > { %1423 = vadd.xlane.f32.xlu1 %v1422_v55 }
 0x7ba   : > { %v1424_v56 = vpop.xlane.xlu1 %1423 }
 0x7bb   : > { %v1425_v57 = vmul.f32 0.03125, %v1424_v56 }
 0x7bd   : > { %v1426_v58 = vadd.f32 1e-05, %v1425_v57 }
 0x7bf   : > { %1845 = vrsqrt.f32 %v1426_v58 }
 0x7cc   : > { %v1846_v59 = vpop.eup %1845 }
 0x7cd   : > { %v1428_v61 = vmul.f32 %v1846_v59, %v1420_v53 }
 0x7cf   : > { %v1435_v63 = vmul.f32 %v1613_v60, %v1428_v61 }
 0x7d1   : > { %v1442_v1 = vadd.f32 %v1614_v62, %v1435_v63 }
 0x7d3   : > { %1443 = vst.msk [vmem:[%s533_s22] sm:$0xff] %vm1196_vm3, %v1442_v1 }
 0x7d4   : > { %1860 = shalt.err (!%p1857_p5)
}
 0x7d5   : > { %s1861_s1 = scalar_lea.hbm %s1457_s3, 128  ;;  %s1865_s17 = scalar_lea.hbm %s2290_s14, 256 }
 0x7d6   : > { %p1862_p6 = scmp.ne.s32.totalorder %s1457_s3, %s1861_s1  ;;  %p1866_p10 = scmp.lt.s32.totalorder %s1457_s3, %s2290_s14 }
 0x7d7   : > { %p1867_p11 = scmp.lt.s32.totalorder %s1865_s17, %s1861_s1 }
 0x7d8   : > { %p1863_p7 = pnand %p1862_p6, %p2043_p4 }
 0x7d9   : > { %p1868_p12 = por %p1867_p11, %p1866_p10 }
 0x7da   : > { %p1864_p9 = pneg %p1863_p7 }
 0x7dc   : > { %p1869_p13 = pnand %p1868_p12, %p1864_p9 }
 0x7de   : > { %1872 = shalt.err (!%p1869_p13)
}
 0x7df   : > { %1758 = dma.vmem_to_hbm [thread:$0]  (%p2043_p4), %s1460_s0, 128, %s1457_s3, %s1445_s4  }
 0x7e0 PF: > { %p1764_p0 = scmp.ge.s32.totalorder %s1923_s18, 2  ;;  %s1471_s22 = sand.u32 1, %s1903_s29  }
 0x7e1   : > { %s1472_s21 = scalar_lea.sflag [#allocation3], %s1471_s22 }
 0x7e2   : > { %p1761_p1 = pnand %p1764_p0, %p2050_p8 }
 0x7e4   : > { %p1762_p2 = pneg %p1761_p1 }
 0x7e6   : > { %1898 = dma.done.wait (%p1762_p2), %s1472_s21, 128  }
 0x7e7   : > { %1900 = vsyncadd (%p1762_p2), %s1472_s21, 4294967168  ;;  %s27_s18 = sadd.s32 1, %s1923_s18   ;;  %s2307_s16 = sld [smem:[#allocation5_spill]] }
 0x7e8   : > { %p24_p3 = scmp.ge.s32.totalorder %s27_s18, 4   ;;  %s2308_s17 = sld [smem:[#allocation6_spill]] }
 0x7e9   : > { %s2309_s29 = smov %s1907_s30  ;;  %s2310_s30 = smov %s1911_s15 }
 0x7ea   : > { %s2311_s15 = smov %s2056_s26  ;;  %26 = sbr.rel (!%p24_p3) target bundleno = 10 (0xa), region = 120 }
 0x7ef   :  { %1477 = vsyncpa [#allocation3], 1 }
 0x7f0   :  { %1479 = vsyncpa [#allocation3 + $0x1], 1 }

// kernel: encoder_forward.5
= control target key start
LH: loop header
LB: loop body
LE: loop exit
PB: predicated region body
PF: predicated region fallthrough
CT: control target
= control target key end

     0   :  { %s1812_s21 = smov 0   ;;  %s1814_s22 = smov 0   ;;  %s2015_s0 = inlined_call_operand.vmem [shape: f32[2,8,32], index: 0, kind: input, shape index: {}]   ;;  %s2016_s1 = inlined_call_operand.vmem [shape: bf16[2,4,8,8], index: 1, kind: input, shape index: {}]   ;;  %s2017_s2 = inlined_call_operand.vmem [shape: bf16[2,4,8,8], index: 2, kind: input, shape index: {}]   ;;  %s2018_s3 = inlined_call_operand.vmem [shape: bf16[2,4,8,8], index: 3, kind: input, shape index: {}]   ;;  %s2019_s4 = inlined_call_operand.vmem [shape: bf16[4,8,32], index: 4, kind: input, shape index: {}]   ;;  %s2020_s5 = inlined_call_operand.vmem [shape: f32[1,32], index: 5, kind: input, shape index: {}]   ;;  %s2021_s6 = inlined_call_operand.vmem [shape: f32[1,32], index: 6, kind: input, shape index: {}]   ;;  %s2022_s7 = inlined_call_operand.vmem [shape: f32[1,32], index: 7, kind: input, shape index: {}]   ;;  %s2023_s8 = inlined_call_operand.vmem [shape: bf16[32,128], index: 8, kind: input, shape index: {}]   ;;  %s2024_s9 = inlined_call_operand.vmem [shape: f32[1,128], index: 9, kind: input, shape index: {}]   ;;  %s2025_s10 = inlined_call_operand.vmem [shape: bf16[128,32], index: 10, kind: input, shape index: {}]   ;;  %s2026_s11 = inlined_call_operand.vmem [shape: f32[1,32], index: 11, kind: input, shape index: {}]   ;;  %s2027_s12 = inlined_call_operand.vmem [shape: f32[2,8,32], index: 12, kind: output, shape index: {}]  }
   0x1   :  { %s1816_s23 = smov 0  }
   0x2 LB: > { %s34_s24 = sadd.s32 1, %s1739_s22  ;;  %p1487_p0 = scmp.ge.s32.totalorder %s1743_s23, 1  ;;  %s1743_s23 = sphi %s1816_s23, %s22_s23   ;;  %s1739_s22 = sphi %s1814_s22, %s2029_s22   ;;  %s1735_s21 = sphi %s1812_s21, %s2028_s21  }
   0x3   : > { %p36_p1 = scmp.ge.s32.totalorder %s34_s24, 2  ;;  %p415_p2 = scmp.lt.s32.totalorder %s1743_s23, 3 }
   0x5   : > { %s2031_s24 = smov (%p36_p1, %s34_s24), 0  ;;  %p416_p3 = pnand %p1487_p0, %p415_p2 }
   0x6   : > { %p479_p4 = scmp.lt.s32.totalorder (!%p416_p3), %s1735_s21, 1 }
   0x7   : > { %419 = sbr.rel (%p416_p3) target bundleno = 1681 (0x691), region = 68 }
   0xc   : > { %v1745_v0 = vmov 0.0   ;;  %vm1746_vm0 = vmmov 0   ;;  %s2033_s21 = smov (!%p479_p4, %s1735_s21), 1  ;;  %vm525_vm1 = vcmask 64512   ;;  %vm761_vm2 = vcmask 1043456  }
   0xd   : > { %1565 = vmatprep.subr.bf16.mxu0 %v1745_v0  ;;  %1567 = vmatprep.mubr.msk.bf16.mxu0 %vm1746_vm0, %v1745_v0  ;;  %s1839_s25 = sshll.u32 %s2033_s21, 4  ;;  %s1488_s29 = sshll.u32 %s2033_s21, 3  ;;  %vm1148_vm3 = vcmask 261120  }
   0xe   : > { %1583 = vmatprep.subr.bf16.mxu1 %v1745_v0  ;;  %1585 = vmatprep.mubr.msk.bf16.mxu1 %vm1746_vm0, %v1745_v0  ;;  %s498_s28 = scalar_lea.vmem %s2017_s2, %s1839_s25  ;;  %s493_s13 = scalar_lea.vmem %s2016_s1, %s1839_s25 }
   0xf   : > { %v517_v1 = vld [vmem:[%s498_s28] sm:$0xf]  ;;  %v520_v3 = vld [vmem:[%s498_s28 + $0xc] sm:$0xf]  ;;  %v518_v5 = vld [vmem:[%s498_s28 + $0x4] sm:$0xf]  ;;  %s503_s16 = scalar_lea.vmem %s2018_s3, %s1839_s25  ;;  %s485_s14 = scalar_lea.vmem %s2015_s0, %s1488_s29 }
  0x10   : > { %v530_v2 = vsel %vm525_vm1, %v517_v1, 0  ;;  %v668_v4 = vsel %vm525_vm1, %v520_v3, 0  ;;  %v513_v6 = vld [vmem:[%s493_s13] sm:$0xf]  ;;  %v576_v7 = vsel %vm525_vm1, %v518_v5, 0  ;;  %s510_s25 = scalar_lea.vmem %s2027_s12, %s1488_s29 }
  0x11   : > { %1566 = vmatpush3.bf16.xpose.msra.mxu0 %v530_v2  ;;  %1584 = vmatpush3.bf16.xpose.msra.mxu1 %v668_v4  ;;  %v516_v8 = vld [vmem:[%s493_s13 + $0xc] sm:$0xf]  ;;  %v519_v9 = vld [vmem:[%s498_s28 + $0x8] sm:$0xf]  ;;  %v514_v10 = vld [vmem:[%s493_s13 + $0x4] sm:$0xf] }
  0x12   : > { %1571 = vmatprep.subr.bf16.mxu0 %v1745_v0  ;;  %1595 = vmatprep.subr.bf16.mxu1 %v1745_v0  ;;  %v622_v11 = vsel %vm525_vm1, %v519_v9, 0  ;;  %v515_v12 = vld [vmem:[%s493_s13 + $0x8] sm:$0xf]  ;;  %v521_v53 = vld [vmem:[%s503_s16] sm:$0xf] }
  0x13   : > { %v763_v54 = vsel %vm761_vm2, %v521_v53, 0  ;;  %v522_v55 = vld [vmem:[%s503_s16 + $0x4] sm:$0xf]  ;;  %v523_v60 = vld [vmem:[%s503_s16 + $0x8] sm:$0xf] }
  0x14   : > { %v809_v56 = vsel %vm761_vm2, %v522_v55, 0  ;;  %v855_v1 = vsel %vm761_vm2, %v523_v60, 0  ;;  %v524_v4 = vld [vmem:[%s503_s16 + $0xc] sm:$0xf]  ;;  %v512_v55 = vld [vmem:[%s485_s14] sm:$0xff] }
  0x18   : > { %1568 = vmatmul.mubr.msk.bf16.vlgmr.msra.gmra.mxu0 %vm525_vm1, %v513_v6  ;;  %1586 = vmatmul.mubr.msk.bf16.vlgmr.msra.gmra.mxu1 %vm525_vm1, %v516_v8 }
  0x19   : > { %1572 = vmatpush3.bf16.xpose.msra.mxu0 %v576_v7  ;;  %1573 = vmatprep.mubr.msk.bf16.mxu0 %vm1746_vm0, %v1745_v0  ;;  %v901_v7 = vsel %vm761_vm2, %v524_v4, 0 }
  0x1a   : > { %1577 = vmatprep.subr.bf16.mxu0 %v1745_v0  ;;  %1597 = vmatprep.mubr.msk.bf16.mxu1 %vm1746_vm0, %v1745_v0 }
  0x1b   : > { %1596 = vmatpush3.bf16.msra.mxu1 %v809_v56 }
  0x1c   : > { %1607 = vmatprep.subr.bf16.mxu1 %v1745_v0 }
  0x20   : > { %1574 = vmatmul.mubr.msk.bf16.vlgmr.msra.gmra.mxu0 %vm525_vm1, %v514_v10 }
  0x21   : > { %1578 = vmatpush3.bf16.xpose.msra.mxu0 %v622_v11  ;;  %1579 = vmatprep.mubr.msk.bf16.mxu0 %vm1746_vm0, %v1745_v0 }
  0x22   : > { %1589 = vmatprep.subr.bf16.mxu0 %v1745_v0 }
  0x28   : > { %1580 = vmatmul.mubr.msk.bf16.vlgmr.msra.gmra.mxu0 %vm525_vm1, %v515_v12 }
  0x29   : > { %1591 = vmatprep.mubr.msk.bf16.mxu0 %vm1746_vm0, %v1745_v0  ;;  %1590 = vmatpush3.bf16.msra.mxu0 %v763_v54 }
  0x2a   : > { %1601 = vmatprep.subr.bf16.mxu0 %v1745_v0 }
  0xd8   : > { %v566_v13 = vpop.f32.mrf.mxu0  ;;  %v704_v16 = vpop.f32.mrf.mxu1 }
  0xd9   : > { %v710_v14 = vsel %vm525_vm1, %v566_v13, -inf  ;;  %v719_v30 = vsel %vm525_vm1, %v704_v16, -inf }
  0xda   : > { %711 = vmax.xlane.f32.xlu0 %v710_v14  ;;  %v1569_v15 = vpop.f32.mrf.mxu0  ;;  %v1587_v18 = vpop.f32.mrf.mxu1  ;;  %v943_v14 = vld [vmem:[%s2019_s4] sm:$0xf] }
  0xdb   : > { %v999_v15 = vsel %vm761_vm2, %v943_v14, 0  ;;  %v946_v18 = vld [vmem:[%s2019_s4 + $0xc] sm:$0xf]  ;;  %v1509_v14 = vld [vmem:[%s2021_s6] ss:$0 sm:$0xff] }
  0xdc   : > { %v569_v17 = vpop.f32.mrf.mxu0  ;;  %v707_v20 = vpop.f32.mrf.mxu1 }
  0xde   : > { %v1570_v19 = vpop.f32.mrf.mxu0  ;;  %v1588_v22 = vpop.f32.mrf.mxu1 }
  0xe0   : > { %v612_v21 = vpop.f32.mrf.mxu0 }
  0xe1   : > { %v713_v23 = vsel %vm525_vm1, %v612_v21, -inf }
  0xe2   : > { %714 = vmax.xlane.f32.xlu0 %v713_v23  ;;  %v1575_v24 = vpop.f32.mrf.mxu0 }
  0xe4   : > { %v615_v25 = vpop.f32.mrf.mxu0 }
  0xe5   : > { %v945_v25 = vld [vmem:[%s2019_s4 + $0x8] sm:$0xf] }
  0xe6   : > { %v1576_v26 = vpop.f32.mrf.mxu0 }
  0xe8   : > { %v658_v27 = vpop.f32.mrf.mxu0 }
  0xe9   : > { %v716_v28 = vsel %vm525_vm1, %v658_v27, -inf }
  0xea   : > { %717 = vmax.xlane.f32.xlu1 %v716_v28  ;;  %v1581_v29 = vpop.f32.mrf.mxu0  ;;  %v1046_v28 = vsel %vm761_vm2, %v945_v25, 0  ;;  %v1698_v25 = vld [vmem:[%s2025_s10 + $0x10] sm:$0xff]  }
  0xec   : > { %v661_v31 = vpop.f32.mrf.mxu0 }
  0xee   : > { %720 = vmax.xlane.f32.xlu1 %v719_v30  ;;  %v1582_v32 = vpop.f32.mrf.mxu0 }
 0x163   : > { %v712_v33 = vpop.xlane.xlu0 %711 }
 0x164   : > { %v722_v34 = vsub.f32 %v566_v13, %v712_v33 }
 0x166   : > { %v726_v35 = vmul.f32 1.442695, %v722_v34 }
 0x168   : > { %1701 = vpow2.f32 %v726_v35 }
 0x16b   : > { %v715_v36 = vpop.xlane.xlu0 %714 }
 0x16c   : > { %v723_v37 = vsub.f32 %v612_v21, %v715_v36  ;;  %v1094_v21 = vsel %vm761_vm2, %v946_v18, 0 }
 0x16e   : > { %v728_v38 = vmul.f32 1.442695, %v723_v37 }
 0x170   : > { %1703 = vpow2.f32 %v728_v38 }
 0x173   : > { %v718_v39 = vpop.xlane.xlu1 %717 }
 0x174   : > { %v724_v40 = vsub.f32 %v658_v27, %v718_v39 }
 0x175   : > { %v1702_v41 = vpop.eup %1701 }
 0x176   : > { %v730_v42 = vmul.f32 1.442695, %v724_v40  ;;  %v734_v43 = vsel %vm525_vm1, %v1702_v41, 0.0 }
 0x177   : > { %735 = vadd.xlane.f32.xlu0 %v734_v43  ;;  %v721_v44 = vpop.xlane.xlu1 %720 }
 0x178   : > { %1705 = vpow2.f32 %v730_v42  ;;  %v725_v45 = vsub.f32 %v704_v16, %v721_v44  ;;  %v944_v16 = vld [vmem:[%s2019_s4 + $0x4] sm:$0xf] }
 0x179   : > { %v953_v17 = vsel %vm761_vm2, %v944_v16, 0  ;;  %v1510_v16 = vld [vmem:[%s2022_s7] ss:$0 sm:$0xff] }
 0x17a   : > { %v732_v46 = vmul.f32 1.442695, %v725_v45 }
 0x17c   : > { %1707 = vpow2.f32 %v732_v46 }
 0x17d   : > { %v1704_v47 = vpop.eup %1703 }
 0x17e   : > { %v737_v48 = vsel %vm525_vm1, %v1704_v47, 0.0 }
 0x17f   : > { %738 = vadd.xlane.f32.xlu1 %v737_v48 }
 0x185   : > { %v1706_v49 = vpop.eup %1705 }
 0x186   : > { %v740_v50 = vsel %vm525_vm1, %v1706_v49, 0.0 }
 0x187   : > { %741 = vadd.xlane.f32.xlu0 %v740_v50 }
 0x189   : > { %v1708_v51 = vpop.eup %1707 }
 0x18a   : > { %v743_v52 = vsel %vm525_vm1, %v1708_v51, 0.0 }
 0x18b   : > { %744 = vadd.xlane.f32.xlu1 %v743_v52 }
 0x200   : > { %v736_v57 = vpop.xlane.xlu0 %735 }
 0x201   : > { %1709 = vrcp.f32 %v736_v57 }
 0x208   : > { %v739_v58 = vpop.xlane.xlu1 %738 }
 0x209   : > { %1711 = vrcp.f32 %v739_v58  ;;  %v1508_v58 = vld [vmem:[%s2020_s5] ss:$0 sm:$0xff] }
 0x20e   : > { %v1710_v59 = vpop.eup %1709 }
 0x20f   : > { %v750_v61 = vmul.f32 %v1710_v59, %v1702_v41 }
 0x210   : > { %v742_v62 = vpop.xlane.xlu0 %741 }
 0x211   : > { %1713 = vrcp.f32 %v742_v62  ;;  %v754_v63 = vpack.c.bf16 %v750_v61, %v750_v61 }
 0x213   : > { %1592 = vmatmul.mubr.msk.bf16.vlgmr.msra.gmra.mxu0 %vm525_vm1, %v754_v63 }
 0x214   : > { %v745_v2 = vpop.xlane.xlu1 %744  ;;  %1602 = vmatpush3.bf16.msra.mxu0 %v855_v1  ;;  %1603 = vmatprep.mubr.msk.bf16.mxu0 %vm1746_vm0, %v1745_v0 }
 0x215   : > { %1715 = vrcp.f32 %v745_v2  ;;  %1613 = vmatprep.subr.bf16.mxu0 %v1745_v0 }
 0x216   : > { %v1712_v3 = vpop.eup %1711 }
 0x217   : > { %v751_v5 = vmul.f32 %v1712_v3, %v1704_v47 }
 0x219   : > { %v755_v6 = vpack.c.bf16 %v751_v5, %v751_v5 }
 0x21b   : > { %1598 = vmatmul.mubr.msk.bf16.vlgmr.msra.gmra.mxu1 %vm525_vm1, %v755_v6 }
 0x21c   : > { %1608 = vmatpush3.bf16.msra.mxu1 %v901_v7  ;;  %1609 = vmatprep.mubr.msk.bf16.mxu1 %vm1746_vm0, %v1745_v0 }
 0x21d   : > { %1619 = vmatprep.subr.bf16.mxu1 %v1745_v0 }
 0x21e   : > { %v1714_v8 = vpop.eup %1713 }
 0x21f   : > { %v752_v9 = vmul.f32 %v1714_v8, %v1706_v49  ;;  %v1691_v8 = vld [vmem:[%s2023_s8 + $0x8] sm:$0xff]  }
 0x221   : > { %v756_v10 = vpack.c.bf16 %v752_v9, %v752_v9  ;;  %v1692_v9 = vld [vmem:[%s2023_s8] sm:$0xff]  }
 0x222   : > { %v1716_v11 = vpop.eup %1715 }
 0x223   : > { %1604 = vmatmul.mubr.msk.bf16.vlgmr.msra.gmra.mxu0 %vm525_vm1, %v756_v10  ;;  %v753_v12 = vmul.f32 %v1716_v11, %v1708_v51 }
 0x224   : > { %1615 = vmatprep.mubr.msk.bf16.mxu0 %vm1746_vm0, %v1745_v0  ;;  %1614 = vmatpush3.bf16.msra.mxu0 %v953_v17 }
 0x225   : > { %v757_v13 = vpack.c.bf16 %v753_v12, %v753_v12  ;;  %1625 = vmatprep.subr.bf16.mxu0 %v1745_v0 }
 0x227   : > { %1610 = vmatmul.mubr.msk.bf16.vlgmr.msra.gmra.mxu1 %vm525_vm1, %v757_v13 }
 0x228   : > { %1621 = vmatprep.mubr.msk.bf16.mxu1 %vm1746_vm0, %v1745_v0  ;;  %1620 = vmatpush3.bf16.msra.mxu1 %v999_v15 }
 0x229   : > { %1631 = vmatprep.subr.bf16.mxu1 %v1745_v0 }
 0x2d3   : > { %v799_v19 = vpop.f32.mrf.mxu0 }
 0x2d4   : > { %v947_v20 = vpack.c.bf16 %v799_v19, %v799_v19 }
 0x2d5   : > { %v1593_v22 = vpop.f32.mrf.mxu0 }
 0x2d6   : > { %1622 = vmatmul.mubr.msk.bf16.vlgmr.msra.gmra.mxu1 %vm525_vm1, %v947_v20  ;;  %v1693_v20 = vld [vmem:[%s2025_s10 + $0x38] sm:$0xff]   ;;  %v1695_v22 = vld [vmem:[%s2025_s10 + $0x28] sm:$0xff]  }
 0x2d7   : > { %v802_v23 = vpop.f32.mrf.mxu0  ;;  %1632 = vmatpush3.bf16.msra.mxu1 %v1094_v21  ;;  %1633 = vmatprep.mubr.msk.bf16.mxu1 %vm1746_vm0, %v1745_v0  ;;  %v1694_v21 = vld [vmem:[%s2025_s10 + $0x30] sm:$0xff]  }
 0x2d8   : > { %1645 = vmatprep.subr.bf16.mxu1 %v1745_v0  ;;  %v1696_v23 = vld [vmem:[%s2025_s10 + $0x20] sm:$0xff]  }
 0x2d9   : > { %v1594_v24 = vpop.f32.mrf.mxu0 }
 0x2da   : > { %v1697_v24 = vld [vmem:[%s2025_s10 + $0x18] sm:$0xff]  }
 0x2db   : > { %v845_v26 = vpop.f32.mrf.mxu1 }
 0x2dc   : > { %v948_v27 = vpack.c.bf16 %v845_v26, %v845_v26  ;;  %v1699_v26 = vld [vmem:[%s2025_s10 + $0x8] sm:$0xff]  }
 0x2dd   : > { %v1599_v29 = vpop.f32.mrf.mxu1 }
 0x2de   : > { %1616 = vmatmul.mubr.msk.bf16.vlgmr.msra.gmra.mxu0 %vm525_vm1, %v948_v27  ;;  %v1700_v27 = vld [vmem:[%s2025_s10] sm:$0xff]  }
 0x2df   : > { %v848_v30 = vpop.f32.mrf.mxu1  ;;  %1626 = vmatpush3.bf16.msra.mxu0 %v1046_v28  ;;  %1627 = vmatprep.mubr.msk.bf16.mxu0 %vm1746_vm0, %v1745_v0  ;;  %v1511_v28 = vld [vmem:[%s2024_s9] ss:$0 sm:$0xff] }
 0x2e0   : > { %1637 = vmatprep.subr.bf16.mxu0 %v1745_v0 }
 0x2e1   : > { %v1600_v31 = vpop.f32.mrf.mxu1 }
 0x2e3   : > { %v891_v32 = vpop.f32.mrf.mxu0 }
 0x2e4   : > { %v1041_v33 = vpack.c.bf16 %v891_v32, %v891_v32 }
 0x2e5   : > { %v1605_v34 = vpop.f32.mrf.mxu0 }
 0x2e6   : > { %1628 = vmatmul.mubr.msk.bf16.vlgmr.msra.gmra.mxu0 %vm525_vm1, %v1041_v33 }
 0x2e7   : > { %v894_v35 = vpop.f32.mrf.mxu0  ;;  %v937_v36 = vpop.f32.mrf.mxu1  ;;  %1641 = vmatprep.mubr.msk.bf16.mxu0 %vm1746_vm0, %v1745_v0  ;;  %1638 = vmatpush3.bf16.msra.mxu0 %v1691_v8 }
 0x2e8   : > { %v1089_v37 = vpack.c.bf16 %v937_v36, %v937_v36  ;;  %1639 = vmatprep.subr.bf16.mxu0 %v1745_v0 }
 0x2e9   : > { %v1606_v38 = vpop.f32.mrf.mxu0  ;;  %v1611_v39 = vpop.f32.mrf.mxu1 }
 0x2ea   : > { %1634 = vmatmul.mubr.msk.bf16.vlgmr.msra.gmra.mxu1 %vm525_vm1, %v1089_v37 }
 0x2eb   : > { %v940_v40 = vpop.f32.mrf.mxu1  ;;  %1661 = vmatprep.mubr.msk.bf16.mxu1 %vm1746_vm0, %v1745_v0  ;;  %1640 = vmatpush3.bf16.msra.mxu0 %v1692_v9 }
 0x2ec   : > { %1646 = vmatpush3.bf16.msra.mxu1 %v1693_v20 }
 0x2ed   : > { %v1612_v41 = vpop.f32.mrf.mxu1  ;;  %1647 = vmatprep.subr.bf16.mxu1 %v1745_v0 }
 0x2f0   : > { %1648 = vmatpush3.bf16.msra.mxu1 %v1694_v21 }
 0x2f1   : > { %1649 = vmatprep.subr.bf16.mxu1 %v1745_v0 }
 0x2f4   : > { %1650 = vmatpush3.bf16.msra.mxu1 %v1695_v22 }
 0x2f5   : > { %1651 = vmatprep.subr.bf16.mxu1 %v1745_v0 }
 0x2f8   : > { %1652 = vmatpush3.bf16.msra.mxu1 %v1696_v23 }
 0x2f9   : > { %1653 = vmatprep.subr.bf16.mxu1 %v1745_v0 }
 0x2fc   : > { %1654 = vmatpush3.bf16.msra.mxu1 %v1697_v24 }
 0x2fd   : > { %1655 = vmatprep.subr.bf16.mxu1 %v1745_v0 }
 0x300   : > { %1656 = vmatpush3.bf16.msra.mxu1 %v1698_v25 }
 0x301   : > { %1657 = vmatprep.subr.bf16.mxu1 %v1745_v0 }
 0x304   : > { %1658 = vmatpush3.bf16.msra.mxu1 %v1699_v26 }
 0x305   : > { %1659 = vmatprep.subr.bf16.mxu1 %v1745_v0 }
 0x308   : > { %1660 = vmatpush3.bf16.msra.mxu1 %v1700_v27 }
 0x396   : > { %v1035_v42 = vpop.f32.mrf.mxu1 }
 0x398   : > { %v1623_v43 = vpop.f32.mrf.mxu1 }
 0x399   : > { %v1515_v43 = vld [vmem:[%s2026_s11] ss:$0 sm:$0xff] }
 0x39a   : > { %v1038_v44 = vpop.f32.mrf.mxu1 }
 0x39c   : > { %v1624_v45 = vpop.f32.mrf.mxu1 }
 0x39e   : > { %v989_v46 = vpop.f32.mrf.mxu0 }
 0x39f   : > { %v1036_v51 = vadd.f32 %v1035_v42, %v989_v46 }
 0x3a0   : > { %v1617_v47 = vpop.f32.mrf.mxu0 }
 0x3a2   : > { %v992_v48 = vpop.f32.mrf.mxu0 }
 0x3a4   : > { %v1618_v49 = vpop.f32.mrf.mxu0 }
 0x3a6   : > { %v1082_v50 = vpop.f32.mrf.mxu0 }
 0x3a7   : > { %v1088_v53 = vadd.f32 %v1082_v50, %v1036_v51 }
 0x3a8   : > { %v1629_v52 = vpop.f32.mrf.mxu0 }
 0x3aa   : > { %v1085_v54 = vpop.f32.mrf.mxu0  ;;  %v1130_v56 = vpop.f32.mrf.mxu1 }
 0x3ab   : > { %v1136_v57 = vadd.f32 %v1130_v56, %v1088_v53 }
 0x3ac   : > { %v1630_v59 = vpop.f32.mrf.mxu0  ;;  %v1635_v60 = vpop.f32.mrf.mxu1 }
 0x3ad   : > { %v1137_v61 = vadd.f32 %v1136_v57, %v512_v55 }
 0x3ae   : > { %v1133_v62 = vpop.f32.mrf.mxu1 }
 0x3af   : > { %v1942_v63 = vadd.f32 %v1508_v58, %v1137_v61 }
 0x3b0   : > { %v1636_v1 = vpop.f32.mrf.mxu1 }
 0x3b1   : > { %v1149_v2 = vsel %vm1148_vm3, %v1942_v63, 0.0 }
 0x3b2   : > { %1150 = vadd.xlane.f32.xlu0 %v1149_v2 }
 0x43b   : > { %v1151_v3 = vpop.xlane.xlu0 %1150 }
 0x43c   : > { %v1153_v4 = vmul.f32 0.03125, %v1151_v3 }
 0x43e   : > { %v1154_v5 = vsub.f32 %v1942_v63, %v1153_v4 }
 0x440   : > { %v1155_v6 = vmul.f32 %v1154_v5, %v1154_v5 }
 0x442   : > { %v1156_v7 = vsel %vm1148_vm3, %v1155_v6, 0.0 }
 0x443   : > { %1157 = vadd.xlane.f32.xlu1 %v1156_v7 }
 0x4cc   : > { %v1158_v10 = vpop.xlane.xlu1 %1157 }
 0x4cd   : > { %v1159_v11 = vmul.f32 0.03125, %v1158_v10 }
 0x4cf   : > { %v1160_v12 = vadd.f32 1e-05, %v1159_v11 }
 0x4d1   : > { %1717 = vrsqrt.f32 %v1160_v12 }
 0x4de   : > { %v1718_v13 = vpop.eup %1717 }
 0x4df   : > { %v1162_v15 = vmul.f32 %v1718_v13, %v1154_v5 }
 0x4e1   : > { %v1169_v17 = vmul.f32 %v1509_v14, %v1162_v15 }
 0x4e3   : > { %v1176_v18 = vadd.f32 %v1510_v16, %v1169_v17 }
 0x4e5   : > { %v1177_v19 = vpack.c.bf16 %v1176_v18, %v1176_v18 }
 0x4e7   : > { %1642 = vmatmul.mubr.msk.bf16.vlgmr.msra.gmra.mxu0 %vm1148_vm3, %v1177_v19 }
 0x5a7   : > { %v1238_v29 = vpop.f32.mrf.mxu0 }
 0x5a8   : > { %v1239_v30 = vadd.f32 %v1511_v28, %v1238_v29 }
 0x5a9   : > { %v1643_v31 = vpop.f32.mrf.mxu0 }
 0x5aa   : > { %v1244_v32 = vmul.f32 %v1239_v30, %v1239_v30 }
 0x5ab   : > { %v1241_v33 = vpop.f32.mrf.mxu0 }
 0x5ac   : > { %v1245_v34 = vmul.f32 %v1244_v32, %v1239_v30 }
 0x5ad   : > { %v1644_v35 = vpop.f32.mrf.mxu0 }
 0x5ae   : > { %v1246_v36 = vmul.f32 0.044715, %v1245_v34 }
 0x5b0   : > { %v1247_v37 = vadd.f32 %v1246_v36, %v1239_v30 }
 0x5b2   : > { %v1248_v38 = vmul.f32 0.7978846, %v1247_v37 }
 0x5b4   : > { %1719 = vtanh.f32 %v1248_v38 }
 0x5c1   : > { %v1720_v39 = vpop.eup %1719 }
 0x5c2   : > { %v1250_v40 = vadd.f32 1.0, %v1720_v39 }
 0x5c4   : > { %v1251_v0 = vmul.f32 0.5, %v1250_v40 }
 0x5c6   : > { %v1252_v41 = vmul.f32 %v1251_v0, %v1239_v30 }
 0x5c8   : > { %v1253_v42 = vpack.c.bf16 %v1252_v41, %v1252_v41 }
 0x5ca   : > { %1662 = vmatmul.mubr.bf16.vlgmr.msra.gmra.mxu1 %v1253_v42 }
 0x68a   : > { %v1359_v44 = vpop.f32.mrf.mxu1 }
 0x68b   : > { %v1360_v45 = vadd.f32 %v1515_v43, %v1359_v44 }
 0x68c   : > { %v1663_v46 = vpop.f32.mrf.mxu1 }
 0x68d   : > { %v1365_v47 = vadd.f32 %v1360_v45, %v1942_v63 }
 0x68e   : > { %v1362_v48 = vpop.f32.mrf.mxu1 }
 0x68f   : > { %1366 = vst.msk [vmem:[%s510_s25] sm:$0xff] %vm1148_vm3, %v1365_v47 }
 0x690   : > { %v1664_v49 = vpop.f32.mrf.mxu1 }
 0x691 PF: > { %s22_s23 = sadd.s32 1, %s1743_s23   ;;  %s2028_s21 = smov %s1739_s22 }
 0x692   : > { %p19_p5 = scmp.ge.s32.totalorder %s22_s23, 4   ;;  %s2029_s22 = smov %s2031_s24 }
 0x694   :  { %21 = sbr.rel (!%p19_p5) target bundleno = 2 (0x2), region = 107 }

</bundles_post_ra>
